<compile_context>
chip_gen: v7x
topology: tpu7x:2x2x1
jax: 0.10.0
libtpu: 0.0.40
codegen_flags: <defaults>
</compile_context>

<pallas_src>
import functools
import math

import jax
import jax.numpy as jnp
from jax.experimental import pallas as pl
from jax.experimental.pallas import tpu as pltpu  # noqa: F401  (TPU backend)

# ---------------- model config (small, synthetic) ----------------
B, S, D = 2, 8, 128          # batch, seq len, d_model (lane-dense: D == 128)
H = 4                        # num heads
DK = D // H                  # per-head dim = 32
DFF = 2 * D                  # position-wise FFN hidden dim = 256
LN_EPS = 1e-6
NEG_INF = -1e9
MXU_DTYPE = jnp.bfloat16     # MXU operand dtype (f32 accumulation everywhere)

# ---- vector-slab layout (all f32, shape (1, VEC_TOTAL), 128-aligned fields) ----
_VEC_FIELDS = (("bqkv", 3 * D), ("bo", D), ("b1", DFF), ("b2", D),
               ("g1", D), ("be1", D), ("g2", D), ("be2", D))
VEC_OFF = {}
_off = 0
for _name, _sz in _VEC_FIELDS:
    VEC_OFF[_name] = (_off, _sz)
    _off += _sz
VEC_TOTAL = _off                         # 1408 = 11 * 128

W_SLAB_COLS = 3 * D + D + DFF            # 896 = [wqkv | wo | w1]


# ---------------- fused encoder-layer kernel ----------------
def _layernorm(x, g, b, eps):
    mean = jnp.mean(x, axis=-1, keepdims=True)
    cent = x - mean
    var = jnp.mean(cent * cent, axis=-1, keepdims=True)
    return cent * jax.lax.rsqrt(var + eps) * g + b


def encoder_layer_kernel(x_ref, bias_ref, w_ref, w2_ref, vec_ref, o_ref, *, eps):
    """Whole encoder layer on a VMEM-resident (B*S, D) activation tile.

    x_ref   : (B*S, D)  f32 flattened tokens
    bias_ref: (B, S)    f32 additive attention mask bias (0 keep / -1e9 pad)
    w_ref   : (D, 3D+D+DFF) bf16 weight slab [Wq(scaled)|Wk|Wv | Wo | W1]
    w2_ref  : (DFF, D)  bf16
    vec_ref : (1, VEC_TOTAL) f32 bias / LayerNorm slab
    """
    x = x_ref[...]                                                   # (B*S, D) f32
    x_mxu = x.astype(MXU_DTYPE)

    def vec(name):
        o, sz = VEC_OFF[name]
        return vec_ref[:, o:o + sz]                                  # (1, sz) f32

    # ---- fused QKV projection (1/sqrt(DK) already folded into Q cols / bq) ----
    wqkv = w_ref[:, 0:3 * D]                                         # (D, 3D) bf16
    qkv = jnp.dot(x_mxu, wqkv,
                  preferred_element_type=jnp.float32) + vec("bqkv")  # (B*S, 3D) f32
    q = qkv[:, 0:D].reshape(B, S, D)
    k = qkv[:, D:2 * D].reshape(B, S, D)
    v = qkv[:, 2 * D:3 * D].reshape(B, S, D)

    # additive mask bias broadcast ONCE and reused by every head
    bias = jnp.broadcast_to(bias_ref[...][:, None, :], (B, S, S))    # (B, S, S) f32

    # ---- multi-head scaled dot-product attention (heads statically unrolled) ----
    heads = []
    for h in range(H):                               # static unroll, H = 4
        lo, hi = h * DK, (h + 1) * DK
        qh = q[:, :, lo:hi].astype(MXU_DTYPE)        # (B, S, DK)
        kh = k[:, :, lo:hi].astype(MXU_DTYPE)
        vh = v[:, :, lo:hi].astype(MXU_DTYPE)
        s = jnp.einsum("bqd,bkd->bqk", qh, kh,
                       preferred_element_type=jnp.float32)           # (B, S, S) f32
        s = s + bias
        s_max = jnp.max(s, axis=-1, keepdims=True)
        p = jnp.exp(s - s_max)
        p = p * pl.reciprocal(jnp.sum(p, axis=-1, keepdims=True), approx=False)
        heads.append(jnp.einsum("bqk,bkd->bqd", p.astype(MXU_DTYPE), vh,
                                preferred_element_type=jnp.float32)) # (B, S, DK) f32
    attn = jnp.concatenate(heads, axis=-1).reshape(B * S, D)         # merge heads

    # ---- output projection + residual + LayerNorm 1 (all f32 elementwise) ----
    wo = w_ref[:, 3 * D:4 * D]                                       # (D, D) bf16
    attn_out = jnp.dot(attn.astype(MXU_DTYPE), wo,
                       preferred_element_type=jnp.float32) + vec("bo")
    x1 = _layernorm(attn_out + x, vec("g1"), vec("be1"), eps)

    # ---- position-wise FFN + residual + LayerNorm 2 ----
    w1 = w_ref[:, 4 * D:4 * D + DFF]                                 # (D, DFF) bf16
    hdn = jnp.dot(x1.astype(MXU_DTYPE), w1,
                  preferred_element_type=jnp.float32) + vec("b1")
    hdn = jnp.maximum(hdn, 0.0)
    ff = jnp.dot(hdn.astype(MXU_DTYPE), w2_ref[...],
                 preferred_element_type=jnp.float32) + vec("b2")
    out = _layernorm(ff + x1, vec("g2"), vec("be2"), eps)

    o_ref[...] = out.astype(o_ref.dtype)                             # lane-dense store


# ---------------- wrapper ----------------
def _full_spec(shape):
    # whole-array VMEM block; no grid -> index_map takes no args
    return pl.BlockSpec(shape, lambda: (0,) * len(shape))


def pack_params(p):
    """One-time packing of weights into 3 slabs (off the hot path)."""
    scale = 1.0 / math.sqrt(DK)
    wq = p["wq"] * scale                     # fold softmax scale into Q projection
    bq = p["bq"] * scale
    wqkv = jnp.concatenate([wq, p["wk"], p["wv"]], axis=1)            # (D, 3D)
    w_slab = jnp.concatenate([wqkv, p["wo"], p["w1"]], axis=1)        # (D, 3D+D+DFF)
    vec_slab = jnp.concatenate([
        bq, p["bk"], p["bv"], p["bo"], p["b1"], p["b2"],
        p["ln1_g"], p["ln1_b"], p["ln2_g"], p["ln2_b"],
    ]).reshape(1, VEC_TOTAL)
    return {
        "w_slab": w_slab.astype(MXU_DTYPE),       # bf16 weights: half the DMA bytes
        "w2": p["w2"].astype(MXU_DTYPE),
        "vec": vec_slab.astype(jnp.float32),      # biases / LN params stay f32
    }


def encoder_layer(packed, src, mask):
    """src: (B,S,D) float32, mask: (B,S) int32 padding mask (1=keep)."""
    x2d = src.reshape(B * S, D)
    mask_bias = jnp.where(mask > 0, 0.0, NEG_INF).astype(jnp.float32)   # (B, S)

    inputs = [x2d, mask_bias, packed["w_slab"], packed["w2"], packed["vec"]]

    kern = functools.partial(encoder_layer_kernel, eps=LN_EPS)
    out2d = pl.pallas_call(
        kern,
        out_shape=jax.ShapeDtypeStruct((B * S, D), jnp.float32),
        in_specs=[_full_spec(a.shape) for a in inputs],
        out_specs=_full_spec((B * S, D)),
    )(*inputs)
    return out2d.reshape(B, S, D)


# ---------------- parameter init (deterministic, synthetic) ----------------
def init_params(key):
    ks = jax.random.split(key, 8)
    sd = 0.02
    p = {}
    p["wq"] = sd * jax.random.normal(ks[0], (D, D), jnp.float32)
    p["wk"] = sd * jax.random.normal(ks[1], (D, D), jnp.float32)
    p["wv"] = sd * jax.random.normal(ks[2], (D, D), jnp.float32)
    p["wo"] = sd * jax.random.normal(ks[3], (D, D), jnp.float32)
    p["bq"] = jnp.zeros((D,), jnp.float32)
    p["bk"] = jnp.zeros((D,), jnp.float32)
    p["bv"] = jnp.zeros((D,), jnp.float32)
    p["bo"] = jnp.zeros((D,), jnp.float32)
    p["w1"] = sd * jax.random.normal(ks[4], (D, DFF), jnp.float32)
    p["b1"] = jnp.zeros((DFF,), jnp.float32)
    p["w2"] = sd * jax.random.normal(ks[5], (DFF, D), jnp.float32)
    p["b2"] = jnp.zeros((D,), jnp.float32)
    p["ln1_g"] = jnp.ones((D,), jnp.float32)
    p["ln1_b"] = jnp.zeros((D,), jnp.float32)
    p["ln2_g"] = jnp.ones((D,), jnp.float32)
    p["ln2_b"] = jnp.zeros((D,), jnp.float32)
    return p


# ---------------- pure-JAX reference (original unpacked params) ----------------
def encoder_layer_ref(p, src, mask, mxu_dtype=jnp.float32):
    """Reference forward.  mxu_dtype=bf16 emulates the kernel's MXU operand cast
    (f32 accumulation, f32 elementwise) for a tight numerical comparison;
    mxu_dtype=f32 is the original full-precision module semantics."""
    f32 = jnp.float32

    def mm(a, b):
        return jnp.dot(a.astype(mxu_dtype), b.astype(mxu_dtype),
                       preferred_element_type=f32)

    x = src.reshape(B * S, D)
    q = (mm(x, p["wq"]) + p["bq"]).reshape(B, S, H, DK).transpose(0, 2, 1, 3)
    k = (mm(x, p["wk"]) + p["bk"]).reshape(B, S, H, DK).transpose(0, 2, 1, 3)
    v = (mm(x, p["wv"]) + p["bv"]).reshape(B, S, H, DK).transpose(0, 2, 1, 3)
    s = jnp.einsum("bhqd,bhkd->bhqk", q.astype(mxu_dtype), k.astype(mxu_dtype),
                   preferred_element_type=f32) / math.sqrt(DK)
    s = jnp.where(mask[:, None, None, :] > 0, s, NEG_INF)
    a = jax.nn.softmax(s, axis=-1)
    o = jnp.einsum("bhqk,bhkd->bhqd", a.astype(mxu_dtype), v.astype(mxu_dtype),
                   preferred_element_type=f32)
    o = o.transpose(0, 2, 1, 3).reshape(B * S, D)
    o = mm(o, p["wo"]) + p["bo"]

    def ln(y, g, b):
        mu = jnp.mean(y, -1, keepdims=True)
        var = jnp.mean((y - mu) ** 2, -1, keepdims=True)
        return (y - mu) * jax.lax.rsqrt(var + LN_EPS) * g + b

    x = ln(o + x, p["ln1_g"], p["ln1_b"])
    ff = mm(jnp.maximum(mm(x, p["w1"]) + p["b1"], 0.0), p["w2"]) + p["b2"]
    return ln(ff + x, p["ln2_g"], p["ln2_b"]).reshape(B, S, D)


if __name__ == "__main__":
    key = jax.random.PRNGKey(0)
    k_param, k_src = jax.random.split(key)
    params = init_params(k_param)
    packed = pack_params(params)

    src = jax.random.normal(k_src, (B, S, D), jnp.float32)
    # padding mask: last 2 positions of batch element 1 are padded
    mask = jnp.ones((B, S), jnp.int32).at[1, -2:].set(0)

    out = jax.block_until_ready(encoder_layer(packed, src, mask))
    assert out.shape == (B, S, D)

    # Tight check: same math (bf16 MXU operands, f32 accumulation) in plain JAX.
    ref_bf16 = encoder_layer_ref(params, src, mask, mxu_dtype=jnp.bfloat16)
    assert jnp.allclose(out, ref_bf16, atol=2e-3, rtol=2e-3), \
        "mismatch vs bf16-operand reference"

    # Loose sanity check vs the original full-f32 module semantics
    # (difference bounded by bf16 MXU-operand rounding).
    ref_f32 = encoder_layer_ref(params, src, mask, mxu_dtype=jnp.float32)
    assert jnp.allclose(out, ref_f32, atol=1e-2, rtol=1e-2), \
        "mismatch vs f32 reference"

    print("KERNEL_OK")
</pallas_src>

<mosaic_0001>
module attributes {stable_mosaic.version = 11 : i64} {
  func.func @encoder_layer_kernel(%arg0: memref<16x128xf32, #tpu.memory_space<vmem>>, %arg1: memref<2x8xf32, #tpu.memory_space<vmem>>, %arg2: memref<128x768xbf16, #tpu.memory_space<vmem>>, %arg3: memref<256x128xbf16, #tpu.memory_space<vmem>>, %arg4: memref<1x1408xf32, #tpu.memory_space<vmem>>, %arg5: memref<16x128xf32, #tpu.memory_space<vmem>>) attributes {dimension_semantics = [], scalar_prefetch = 0 : i64, scratch_operands = 0 : i64, tpu.core_type = #tpu.core_type<tc>} {
    %c0 = arith.constant 0 : index
    %c0_0 = arith.constant 0 : index
    %0 = vector.load %arg0[%c0, %c0_0] : memref<16x128xf32, #tpu.memory_space<vmem>>, vector<16x128xf32>
    %1 = arith.truncf %0 : vector<16x128xf32> to vector<16x128xbf16>
    %c0_1 = arith.constant 0 : index
    %c0_2 = arith.constant 0 : index
    %2 = vector.load %arg2[%c0_1, %c0_2] : memref<128x768xbf16, #tpu.memory_space<vmem>>, vector<128x384xbf16>
    %cst = arith.constant dense<0.000000e+00> : vector<16x384xf32>
    %3 = tpu.matmul %1, %2, %cst {dimension_numbers = #tpu.dot_dimension_numbers<[1], [0], [0], [1], [0, 0, 1, 1], [], []>} : vector<16x128xbf16>, vector<128x384xbf16>, vector<16x384xf32> -> vector<16x384xf32>
    %c0_3 = arith.constant 0 : index
    %c0_4 = arith.constant 0 : index
    %4 = vector.load %arg4[%c0_3, %c0_4] : memref<1x1408xf32, #tpu.memory_space<vmem>>, vector<1x384xf32>
    %5 = vector.broadcast %4 : vector<1x384xf32> to vector<16x384xf32>
    %6 = arith.addf %3, %5 : vector<16x384xf32>
    %7 = vector.extract_strided_slice %6 {offsets = [0, 0], sizes = [16, 128], strides = [1, 1]} : vector<16x384xf32> to vector<16x128xf32>
    %8 = vector.shape_cast %7 : vector<16x128xf32> to vector<2x8x128xf32>
    %9 = vector.extract_strided_slice %6 {offsets = [0, 128], sizes = [16, 128], strides = [1, 1]} : vector<16x384xf32> to vector<16x128xf32>
    %10 = vector.shape_cast %9 : vector<16x128xf32> to vector<2x8x128xf32>
    %11 = vector.extract_strided_slice %6 {offsets = [0, 256], sizes = [16, 128], strides = [1, 1]} : vector<16x384xf32> to vector<16x128xf32>
    %12 = vector.shape_cast %11 : vector<16x128xf32> to vector<2x8x128xf32>
    %c0_5 = arith.constant 0 : index
    %c0_6 = arith.constant 0 : index
    %13 = vector.load %arg1[%c0_5, %c0_6] : memref<2x8xf32, #tpu.memory_space<vmem>>, vector<2x8xf32>
    %14 = vector.shape_cast %13 : vector<2x8xf32> to vector<2x1x8xf32>
    %15 = vector.shape_cast %14 : vector<2x1x8xf32> to vector<2x1x8xf32>
    %16 = vector.broadcast %15 : vector<2x1x8xf32> to vector<2x8x8xf32>
    %17 = vector.extract_strided_slice %8 {offsets = [0, 0, 0], sizes = [2, 8, 32], strides = [1, 1, 1]} : vector<2x8x128xf32> to vector<2x8x32xf32>
    %18 = arith.truncf %17 : vector<2x8x32xf32> to vector<2x8x32xbf16>
    %19 = vector.extract_strided_slice %10 {offsets = [0, 0, 0], sizes = [2, 8, 32], strides = [1, 1, 1]} : vector<2x8x128xf32> to vector<2x8x32xf32>
    %20 = arith.truncf %19 : vector<2x8x32xf32> to vector<2x8x32xbf16>
    %21 = vector.extract_strided_slice %12 {offsets = [0, 0, 0], sizes = [2, 8, 32], strides = [1, 1, 1]} : vector<2x8x128xf32> to vector<2x8x32xf32>
    %22 = arith.truncf %21 : vector<2x8x32xf32> to vector<2x8x32xbf16>
    "tpu.trace_start"() <{level = 10 : i32, message = "bqd,bkd->bqk"}> : () -> ()
    %cst_7 = arith.constant dense<0.000000e+00> : vector<2x8x8xf32>
    %23 = tpu.matmul %18, %20, %cst_7 {dimension_numbers = #tpu.dot_dimension_numbers<[2], [2], [1], [1], [0, 0, 0, 1, 1, 1], [0], [0]>} : vector<2x8x32xbf16>, vector<2x8x32xbf16>, vector<2x8x8xf32> -> vector<2x8x8xf32>
    "tpu.trace_stop"() : () -> ()
    %24 = arith.addf %23, %16 : vector<2x8x8xf32>
    %cst_8 = arith.constant dense<0xFF800000> : vector<2x8xf32>
    %25 = vector.multi_reduction <maximumf>, %24, %cst_8 [2] : vector<2x8x8xf32> to vector<2x8xf32>
    %26 = vector.shape_cast %25 : vector<2x8xf32> to vector<2x8x1xf32>
    %27 = vector.broadcast %26 : vector<2x8x1xf32> to vector<2x8x8xf32>
    %28 = arith.subf %24, %27 : vector<2x8x8xf32>
    %29 = math.exp %28 : vector<2x8x8xf32>
    %cst_9 = arith.constant dense<0.000000e+00> : vector<2x8xf32>
    %30 = vector.multi_reduction <add>, %29, %cst_9 [2] : vector<2x8x8xf32> to vector<2x8xf32>
    %31 = vector.shape_cast %30 : vector<2x8xf32> to vector<2x8x1xf32>
    %32 = tpu.reciprocal %31 : vector<2x8x1xf32> -> vector<2x8x1xf32>
    %33 = vector.broadcast %32 : vector<2x8x1xf32> to vector<2x8x8xf32>
    %34 = arith.mulf %29, %33 : vector<2x8x8xf32>
    %35 = arith.truncf %34 : vector<2x8x8xf32> to vector<2x8x8xbf16>
    "tpu.trace_start"() <{level = 10 : i32, message = "bqk,bkd->bqd"}> : () -> ()
    %cst_10 = arith.constant dense<0.000000e+00> : vector<2x8x32xf32>
    %36 = tpu.matmul %35, %22, %cst_10 {dimension_numbers = #tpu.dot_dimension_numbers<[2], [1], [1], [2], [0, 0, 0, 1, 1, 2], [0], [0]>} : vector<2x8x8xbf16>, vector<2x8x32xbf16>, vector<2x8x32xf32> -> vector<2x8x32xf32>
    "tpu.trace_stop"() : () -> ()
    %37 = vector.extract_strided_slice %8 {offsets = [0, 0, 32], sizes = [2, 8, 32], strides = [1, 1, 1]} : vector<2x8x128xf32> to vector<2x8x32xf32>
    %38 = arith.truncf %37 : vector<2x8x32xf32> to vector<2x8x32xbf16>
    %39 = vector.extract_strided_slice %10 {offsets = [0, 0, 32], sizes = [2, 8, 32], strides = [1, 1, 1]} : vector<2x8x128xf32> to vector<2x8x32xf32>
    %40 = arith.truncf %39 : vector<2x8x32xf32> to vector<2x8x32xbf16>
    %41 = vector.extract_strided_slice %12 {offsets = [0, 0, 32], sizes = [2, 8, 32], strides = [1, 1, 1]} : vector<2x8x128xf32> to vector<2x8x32xf32>
    %42 = arith.truncf %41 : vector<2x8x32xf32> to vector<2x8x32xbf16>
    "tpu.trace_start"() <{level = 10 : i32, message = "bqd,bkd->bqk"}> : () -> ()
    %cst_11 = arith.constant dense<0.000000e+00> : vector<2x8x8xf32>
    %43 = tpu.matmul %38, %40, %cst_11 {dimension_numbers = #tpu.dot_dimension_numbers<[2], [2], [1], [1], [0, 0, 0, 1, 1, 1], [0], [0]>} : vector<2x8x32xbf16>, vector<2x8x32xbf16>, vector<2x8x8xf32> -> vector<2x8x8xf32>
    "tpu.trace_stop"() : () -> ()
    %44 = arith.addf %43, %16 : vector<2x8x8xf32>
    %cst_12 = arith.constant dense<0xFF800000> : vector<2x8xf32>
    %45 = vector.multi_reduction <maximumf>, %44, %cst_12 [2] : vector<2x8x8xf32> to vector<2x8xf32>
    %46 = vector.shape_cast %45 : vector<2x8xf32> to vector<2x8x1xf32>
    %47 = vector.broadcast %46 : vector<2x8x1xf32> to vector<2x8x8xf32>
    %48 = arith.subf %44, %47 : vector<2x8x8xf32>
    %49 = math.exp %48 : vector<2x8x8xf32>
    %cst_13 = arith.constant dense<0.000000e+00> : vector<2x8xf32>
    %50 = vector.multi_reduction <add>, %49, %cst_13 [2] : vector<2x8x8xf32> to vector<2x8xf32>
    %51 = vector.shape_cast %50 : vector<2x8xf32> to vector<2x8x1xf32>
    %52 = tpu.reciprocal %51 : vector<2x8x1xf32> -> vector<2x8x1xf32>
    %53 = vector.broadcast %52 : vector<2x8x1xf32> to vector<2x8x8xf32>
    %54 = arith.mulf %49, %53 : vector<2x8x8xf32>
    %55 = arith.truncf %54 : vector<2x8x8xf32> to vector<2x8x8xbf16>
    "tpu.trace_start"() <{level = 10 : i32, message = "bqk,bkd->bqd"}> : () -> ()
    %cst_14 = arith.constant dense<0.000000e+00> : vector<2x8x32xf32>
    %56 = tpu.matmul %55, %42, %cst_14 {dimension_numbers = #tpu.dot_dimension_numbers<[2], [1], [1], [2], [0, 0, 0, 1, 1, 2], [0], [0]>} : vector<2x8x8xbf16>, vector<2x8x32xbf16>, vector<2x8x32xf32> -> vector<2x8x32xf32>
    "tpu.trace_stop"() : () -> ()
    %57 = vector.extract_strided_slice %8 {offsets = [0, 0, 64], sizes = [2, 8, 32], strides = [1, 1, 1]} : vector<2x8x128xf32> to vector<2x8x32xf32>
    %58 = arith.truncf %57 : vector<2x8x32xf32> to vector<2x8x32xbf16>
    %59 = vector.extract_strided_slice %10 {offsets = [0, 0, 64], sizes = [2, 8, 32], strides = [1, 1, 1]} : vector<2x8x128xf32> to vector<2x8x32xf32>
    %60 = arith.truncf %59 : vector<2x8x32xf32> to vector<2x8x32xbf16>
    %61 = vector.extract_strided_slice %12 {offsets = [0, 0, 64], sizes = [2, 8, 32], strides = [1, 1, 1]} : vector<2x8x128xf32> to vector<2x8x32xf32>
    %62 = arith.truncf %61 : vector<2x8x32xf32> to vector<2x8x32xbf16>
    "tpu.trace_start"() <{level = 10 : i32, message = "bqd,bkd->bqk"}> : () -> ()
    %cst_15 = arith.constant dense<0.000000e+00> : vector<2x8x8xf32>
    %63 = tpu.matmul %58, %60, %cst_15 {dimension_numbers = #tpu.dot_dimension_numbers<[2], [2], [1], [1], [0, 0, 0, 1, 1, 1], [0], [0]>} : vector<2x8x32xbf16>, vector<2x8x32xbf16>, vector<2x8x8xf32> -> vector<2x8x8xf32>
    "tpu.trace_stop"() : () -> ()
    %64 = arith.addf %63, %16 : vector<2x8x8xf32>
    %cst_16 = arith.constant dense<0xFF800000> : vector<2x8xf32>
    %65 = vector.multi_reduction <maximumf>, %64, %cst_16 [2] : vector<2x8x8xf32> to vector<2x8xf32>
    %66 = vector.shape_cast %65 : vector<2x8xf32> to vector<2x8x1xf32>
    %67 = vector.broadcast %66 : vector<2x8x1xf32> to vector<2x8x8xf32>
    %68 = arith.subf %64, %67 : vector<2x8x8xf32>
    %69 = math.exp %68 : vector<2x8x8xf32>
    %cst_17 = arith.constant dense<0.000000e+00> : vector<2x8xf32>
    %70 = vector.multi_reduction <add>, %69, %cst_17 [2] : vector<2x8x8xf32> to vector<2x8xf32>
    %71 = vector.shape_cast %70 : vector<2x8xf32> to vector<2x8x1xf32>
    %72 = tpu.reciprocal %71 : vector<2x8x1xf32> -> vector<2x8x1xf32>
    %73 = vector.broadcast %72 : vector<2x8x1xf32> to vector<2x8x8xf32>
    %74 = arith.mulf %69, %73 : vector<2x8x8xf32>
    %75 = arith.truncf %74 : vector<2x8x8xf32> to vector<2x8x8xbf16>
    "tpu.trace_start"() <{level = 10 : i32, message = "bqk,bkd->bqd"}> : () -> ()
    %cst_18 = arith.constant dense<0.000000e+00> : vector<2x8x32xf32>
    %76 = tpu.matmul %75, %62, %cst_18 {dimension_numbers = #tpu.dot_dimension_numbers<[2], [1], [1], [2], [0, 0, 0, 1, 1, 2], [0], [0]>} : vector<2x8x8xbf16>, vector<2x8x32xbf16>, vector<2x8x32xf32> -> vector<2x8x32xf32>
    "tpu.trace_stop"() : () -> ()
    %77 = vector.extract_strided_slice %8 {offsets = [0, 0, 96], sizes = [2, 8, 32], strides = [1, 1, 1]} : vector<2x8x128xf32> to vector<2x8x32xf32>
    %78 = arith.truncf %77 : vector<2x8x32xf32> to vector<2x8x32xbf16>
    %79 = vector.extract_strided_slice %10 {offsets = [0, 0, 96], sizes = [2, 8, 32], strides = [1, 1, 1]} : vector<2x8x128xf32> to vector<2x8x32xf32>
    %80 = arith.truncf %79 : vector<2x8x32xf32> to vector<2x8x32xbf16>
    %81 = vector.extract_strided_slice %12 {offsets = [0, 0, 96], sizes = [2, 8, 32], strides = [1, 1, 1]} : vector<2x8x128xf32> to vector<2x8x32xf32>
    %82 = arith.truncf %81 : vector<2x8x32xf32> to vector<2x8x32xbf16>
    "tpu.trace_start"() <{level = 10 : i32, message = "bqd,bkd->bqk"}> : () -> ()
    %cst_19 = arith.constant dense<0.000000e+00> : vector<2x8x8xf32>
    %83 = tpu.matmul %78, %80, %cst_19 {dimension_numbers = #tpu.dot_dimension_numbers<[2], [2], [1], [1], [0, 0, 0, 1, 1, 1], [0], [0]>} : vector<2x8x32xbf16>, vector<2x8x32xbf16>, vector<2x8x8xf32> -> vector<2x8x8xf32>
    "tpu.trace_stop"() : () -> ()
    %84 = arith.addf %83, %16 : vector<2x8x8xf32>
    %cst_20 = arith.constant dense<0xFF800000> : vector<2x8xf32>
    %85 = vector.multi_reduction <maximumf>, %84, %cst_20 [2] : vector<2x8x8xf32> to vector<2x8xf32>
    %86 = vector.shape_cast %85 : vector<2x8xf32> to vector<2x8x1xf32>
    %87 = vector.broadcast %86 : vector<2x8x1xf32> to vector<2x8x8xf32>
    %88 = arith.subf %84, %87 : vector<2x8x8xf32>
    %89 = math.exp %88 : vector<2x8x8xf32>
    %cst_21 = arith.constant dense<0.000000e+00> : vector<2x8xf32>
    %90 = vector.multi_reduction <add>, %89, %cst_21 [2] : vector<2x8x8xf32> to vector<2x8xf32>
    %91 = vector.shape_cast %90 : vector<2x8xf32> to vector<2x8x1xf32>
    %92 = tpu.reciprocal %91 : vector<2x8x1xf32> -> vector<2x8x1xf32>
    %93 = vector.broadcast %92 : vector<2x8x1xf32> to vector<2x8x8xf32>
    %94 = arith.mulf %89, %93 : vector<2x8x8xf32>
    %95 = arith.truncf %94 : vector<2x8x8xf32> to vector<2x8x8xbf16>
    "tpu.trace_start"() <{level = 10 : i32, message = "bqk,bkd->bqd"}> : () -> ()
    %cst_22 = arith.constant dense<0.000000e+00> : vector<2x8x32xf32>
    %96 = tpu.matmul %95, %82, %cst_22 {dimension_numbers = #tpu.dot_dimension_numbers<[2], [1], [1], [2], [0, 0, 0, 1, 1, 2], [0], [0]>} : vector<2x8x8xbf16>, vector<2x8x32xbf16>, vector<2x8x32xf32> -> vector<2x8x32xf32>
    "tpu.trace_stop"() : () -> ()
    %97 = tpu.concatenate %36, %56, %76, %96 in 2 : vector<2x8x32xf32>, vector<2x8x32xf32>, vector<2x8x32xf32>, vector<2x8x32xf32> -> vector<2x8x128xf32>
    %98 = vector.shape_cast %97 : vector<2x8x128xf32> to vector<16x128xf32>
    %c0_23 = arith.constant 0 : index
    %c384 = arith.constant 384 : index
    %99 = vector.load %arg2[%c0_23, %c384] : memref<128x768xbf16, #tpu.memory_space<vmem>>, vector<128x128xbf16>
    %100 = arith.truncf %98 : vector<16x128xf32> to vector<16x128xbf16>
    %cst_24 = arith.constant dense<0.000000e+00> : vector<16x128xf32>
    %101 = tpu.matmul %100, %99, %cst_24 {dimension_numbers = #tpu.dot_dimension_numbers<[1], [0], [0], [1], [0, 0, 1, 1], [], []>} : vector<16x128xbf16>, vector<128x128xbf16>, vector<16x128xf32> -> vector<16x128xf32>
    %c0_25 = arith.constant 0 : index
    %c384_26 = arith.constant 384 : index
    %102 = vector.load %arg4[%c0_25, %c384_26] : memref<1x1408xf32, #tpu.memory_space<vmem>>, vector<1x128xf32>
    %103 = vector.broadcast %102 : vector<1x128xf32> to vector<16x128xf32>
    %104 = arith.addf %101, %103 : vector<16x128xf32>
    %105 = arith.addf %104, %0 : vector<16x128xf32>
    %c0_27 = arith.constant 0 : index
    %c896 = arith.constant 896 : index
    %106 = vector.load %arg4[%c0_27, %c896] : memref<1x1408xf32, #tpu.memory_space<vmem>>, vector<1x128xf32>
    %c0_28 = arith.constant 0 : index
    %c1024 = arith.constant 1024 : index
    %107 = vector.load %arg4[%c0_28, %c1024] : memref<1x1408xf32, #tpu.memory_space<vmem>>, vector<1x128xf32>
    %cst_29 = arith.constant dense<0.000000e+00> : vector<16xf32>
    %108 = vector.multi_reduction <add>, %105, %cst_29 [1] : vector<16x128xf32> to vector<16xf32>
    %109 = vector.shape_cast %108 : vector<16xf32> to vector<16x1xf32>
    %cst_30 = arith.constant 1.280000e+02 : f32
    %110 = vector.broadcast %cst_30 : f32 to vector<16x1xf32>
    %111 = arith.divf %109, %110 : vector<16x1xf32>
    %112 = vector.broadcast %111 : vector<16x1xf32> to vector<16x128xf32>
    %113 = arith.subf %105, %112 : vector<16x128xf32>
    %114 = arith.mulf %113, %113 : vector<16x128xf32>
    %cst_31 = arith.constant dense<0.000000e+00> : vector<16xf32>
    %115 = vector.multi_reduction <add>, %114, %cst_31 [1] : vector<16x128xf32> to vector<16xf32>
    %116 = vector.shape_cast %115 : vector<16xf32> to vector<16x1xf32>
    %cst_32 = arith.constant 1.280000e+02 : f32
    %117 = vector.broadcast %cst_32 : f32 to vector<16x1xf32>
    %118 = arith.divf %116, %117 : vector<16x1xf32>
    %cst_33 = arith.constant 9.99999997E-7 : f32
    %119 = vector.broadcast %cst_33 : f32 to vector<16x1xf32>
    %120 = arith.addf %118, %119 : vector<16x1xf32>
    %121 = math.rsqrt %120 : vector<16x1xf32>
    %122 = vector.broadcast %121 : vector<16x1xf32> to vector<16x128xf32>
    %123 = arith.mulf %113, %122 : vector<16x128xf32>
    %124 = vector.broadcast %106 : vector<1x128xf32> to vector<16x128xf32>
    %125 = arith.mulf %123, %124 : vector<16x128xf32>
    %126 = vector.broadcast %107 : vector<1x128xf32> to vector<16x128xf32>
    %127 = arith.addf %125, %126 : vector<16x128xf32>
    %c0_34 = arith.constant 0 : index
    %c512 = arith.constant 512 : index
    %128 = vector.load %arg2[%c0_34, %c512] : memref<128x768xbf16, #tpu.memory_space<vmem>>, vector<128x256xbf16>
    %129 = arith.truncf %127 : vector<16x128xf32> to vector<16x128xbf16>
    %cst_35 = arith.constant dense<0.000000e+00> : vector<16x256xf32>
    %130 = tpu.matmul %129, %128, %cst_35 {dimension_numbers = #tpu.dot_dimension_numbers<[1], [0], [0], [1], [0, 0, 1, 1], [], []>} : vector<16x128xbf16>, vector<128x256xbf16>, vector<16x256xf32> -> vector<16x256xf32>
    %c0_36 = arith.constant 0 : index
    %c512_37 = arith.constant 512 : index
    %131 = vector.load %arg4[%c0_36, %c512_37] : memref<1x1408xf32, #tpu.memory_space<vmem>>, vector<1x256xf32>
    %132 = vector.broadcast %131 : vector<1x256xf32> to vector<16x256xf32>
    %133 = arith.addf %130, %132 : vector<16x256xf32>
    %cst_38 = arith.constant 0.000000e+00 : f32
    %134 = vector.broadcast %cst_38 : f32 to vector<16x256xf32>
    %135 = arith.maximumf %133, %134 : vector<16x256xf32>
    %136 = arith.truncf %135 : vector<16x256xf32> to vector<16x256xbf16>
    %c0_39 = arith.constant 0 : index
    %c0_40 = arith.constant 0 : index
    %137 = vector.load %arg3[%c0_39, %c0_40] : memref<256x128xbf16, #tpu.memory_space<vmem>>, vector<256x128xbf16>
    %cst_41 = arith.constant dense<0.000000e+00> : vector<16x128xf32>
    %138 = tpu.matmul %136, %137, %cst_41 {dimension_numbers = #tpu.dot_dimension_numbers<[1], [0], [0], [1], [0, 0, 1, 1], [], []>} : vector<16x256xbf16>, vector<256x128xbf16>, vector<16x128xf32> -> vector<16x128xf32>
    %c0_42 = arith.constant 0 : index
    %c768 = arith.constant 768 : index
    %139 = vector.load %arg4[%c0_42, %c768] : memref<1x1408xf32, #tpu.memory_space<vmem>>, vector<1x128xf32>
    %140 = vector.broadcast %139 : vector<1x128xf32> to vector<16x128xf32>
    %141 = arith.addf %138, %140 : vector<16x128xf32>
    %142 = arith.addf %141, %127 : vector<16x128xf32>
    %c0_43 = arith.constant 0 : index
    %c1152 = arith.constant 1152 : index
    %143 = vector.load %arg4[%c0_43, %c1152] : memref<1x1408xf32, #tpu.memory_space<vmem>>, vector<1x128xf32>
    %c0_44 = arith.constant 0 : index
    %c1280 = arith.constant 1280 : index
    %144 = vector.load %arg4[%c0_44, %c1280] : memref<1x1408xf32, #tpu.memory_space<vmem>>, vector<1x128xf32>
    %cst_45 = arith.constant dense<0.000000e+00> : vector<16xf32>
    %145 = vector.multi_reduction <add>, %142, %cst_45 [1] : vector<16x128xf32> to vector<16xf32>
    %146 = vector.shape_cast %145 : vector<16xf32> to vector<16x1xf32>
    %cst_46 = arith.constant 1.280000e+02 : f32
    %147 = vector.broadcast %cst_46 : f32 to vector<16x1xf32>
    %148 = arith.divf %146, %147 : vector<16x1xf32>
    %149 = vector.broadcast %148 : vector<16x1xf32> to vector<16x128xf32>
    %150 = arith.subf %142, %149 : vector<16x128xf32>
    %151 = arith.mulf %150, %150 : vector<16x128xf32>
    %cst_47 = arith.constant dense<0.000000e+00> : vector<16xf32>
    %152 = vector.multi_reduction <add>, %151, %cst_47 [1] : vector<16x128xf32> to vector<16xf32>
    %153 = vector.shape_cast %152 : vector<16xf32> to vector<16x1xf32>
    %cst_48 = arith.constant 1.280000e+02 : f32
    %154 = vector.broadcast %cst_48 : f32 to vector<16x1xf32>
    %155 = arith.divf %153, %154 : vector<16x1xf32>
    %cst_49 = arith.constant 9.99999997E-7 : f32
    %156 = vector.broadcast %cst_49 : f32 to vector<16x1xf32>
    %157 = arith.addf %155, %156 : vector<16x1xf32>
    %158 = math.rsqrt %157 : vector<16x1xf32>
    %159 = vector.broadcast %158 : vector<16x1xf32> to vector<16x128xf32>
    %160 = arith.mulf %150, %159 : vector<16x128xf32>
    %161 = vector.broadcast %143 : vector<1x128xf32> to vector<16x128xf32>
    %162 = arith.mulf %160, %161 : vector<16x128xf32>
    %163 = vector.broadcast %144 : vector<1x128xf32> to vector<16x128xf32>
    %164 = arith.addf %162, %163 : vector<16x128xf32>
    %c0_50 = arith.constant 0 : index
    %c0_51 = arith.constant 0 : index
    %165 = vector.load %arg5[%c0_50, %c0_51] : memref<16x128xf32, #tpu.memory_space<vmem>>, vector<16x128xf32>
    tpu.vector_store %arg5[%c0_50, %c0_51], %164 {strides = array<i32>} : memref<16x128xf32, #tpu.memory_space<vmem>>, vector<16x128xf32>,
    return
  }
}

</mosaic_0001>

<bundles_post_ra>
// kernel: tpu_custom_call.1
= control target key start
LH: loop header
LB: loop body
LE: loop exit
PB: predicated region body
PF: predicated region fallthrough
CT: control target
= control target key end

     0   :  { %10 = vsyncpa [#allocation3], 0  ;;  %s2730_s0 = inlined_call_operand.hbm [shape: f32[16,128], index: 0, kind: input, shape index: {}]   ;;  %s2731_s1 = inlined_call_operand.vmem [shape: f32[2,8], index: 1, kind: input, shape index: {}]   ;;  %s2732_s2 = inlined_call_operand.hbm [shape: bf16[128,768], index: 2, kind: input, shape index: {}]   ;;  %s2733_s3 = inlined_call_operand.hbm [shape: bf16[256,128], index: 3, kind: input, shape index: {}]   ;;  %s2734_s4 = inlined_call_operand.vmem [shape: f32[1,1408], index: 4, kind: input, shape index: {}]   ;;  %s2735_s5 = inlined_call_operand.hbm [shape: f32[16,128], index: 5, kind: output, shape index: {}]  }
   0x1   :  { %11 = vsyncpa [#allocation6], 0 }
   0x2   :  { %12 = vsyncpa [#allocation4], 0  ;;  %s2368_s18 = smov [#allocation5]   ;;  %s2274_s22 = scalar_lea.hbm %s2732_s2, 6144 }
   0x3   :  { %s32_s19 = sshll.u32 %s2368_s18, 4  ;;  %p2275_p0 = scmp.ne.s32.totalorder %s2732_s2, %s2274_s22  ;;  %s33_s19 = int_to_ptr.vmem [resolvable:$true] %s32_s19 }
   0x4   :  { %p2278_p1 = scmp.lt.u32.totalorder %s2274_s22, %s2732_s2 }
   0x6   :  { %p2280_p2 = pnand %p2278_p1, %p2275_p0 }
   0x8   :  { %2283 = shalt.err (!%p2280_p2)
}
   0x9   :  { %s2284_s27 = scalar_lea.vmem %s33_s19, 6144  ;;  %p2289_p4 = scmp.lt.s32.totalorder %s33_s19, %s33_s19 }
   0xa   :  { %p2285_p3 = scmp.ne.s32.totalorder %s33_s19, %s2284_s27  ;;  %p2290_p5 = scmp.lt.s32.totalorder %s2284_s27, %s2284_s27 }
   0xc   :  { %p2291_p6 = por %p2290_p5, %p2289_p4 }
   0xe   :  { %p2292_p7 = pnand %p2291_p6, %p2285_p3 }
  0x10   :  { %2295 = shalt.err (!%p2292_p7)
}
  0x11   :  { %s2369_s28 = smov 384   ;;  %s2370_s29 = smov 24  }
  0x12   :  { %38 = dma.hbm_to_vmem [thread:$0]  %s2732_s2, 6144, %s33_s19, [#allocation6], %s2369_s28, %s2369_s28, %s2370_s29  }
  0x13   :  { %s2371_s7 = smov [#allocation2]   ;;  %s2296_s11 = scalar_lea.hbm %s2730_s0, 256 }
  0x14   :  { %s18_s8 = sshll.u32 %s2371_s7, 4  ;;  %p2297_p8 = scmp.ne.s32.totalorder %s2730_s0, %s2296_s11  ;;  %s19_s8 = int_to_ptr.vmem [resolvable:$true] %s18_s8 }
  0x15   :  { %p2300_p9 = scmp.lt.u32.totalorder %s2296_s11, %s2730_s0 }
  0x17   :  { %p2302_p10 = pnand %p2300_p9, %p2297_p8 }
  0x19   :  { %2305 = shalt.err (!%p2302_p10)
}
  0x1a   :  { %s2306_s16 = scalar_lea.vmem %s19_s8, 256  ;;  %p2311_p12 = scmp.lt.s32.totalorder %s19_s8, %s19_s8 }
  0x1b   :  { %p2307_p11 = scmp.ne.s32.totalorder %s19_s8, %s2306_s16  ;;  %p2312_p13 = scmp.lt.s32.totalorder %s2306_s16, %s2306_s16 }
  0x1d   :  { %p2313_p0 = por %p2312_p13, %p2311_p12 }
  0x1f   :  { %p2314_p1 = pnand %p2313_p0, %p2307_p11 }
  0x21   :  { %2317 = shalt.err (!%p2314_p1)
}
  0x22   :  { %s2372_s2 = smov 128   ;;  %s2373_s17 = smov 8  }
  0x23   :  { %24 = dma.hbm_to_vmem [thread:$0]  %s2730_s0, 256, %s19_s8, [#allocation3], %s2372_s2, %s2372_s2, %s2373_s17  }
  0x24   :  { %s2374_s20 = smov [#allocation7]   ;;  %s2318_s24 = scalar_lea.hbm %s2733_s3, 2048 }
  0x25   :  { %s44_s21 = sshll.u32 %s2374_s20, 4  ;;  %p2319_p2 = scmp.ne.s32.totalorder %s2733_s3, %s2318_s24  ;;  %s45_s21 = int_to_ptr.vmem [resolvable:$true] %s44_s21 }
  0x26   :  { %p2322_p3 = scmp.lt.u32.totalorder %s2318_s24, %s2733_s3 }
  0x28   :  { %p2324_p4 = pnand %p2322_p3, %p2319_p2 }
  0x2a   :  { %2327 = shalt.err (!%p2324_p4)
}
  0x2b   :  { %s2328_s29 = scalar_lea.vmem %s45_s21, 2048  ;;  %p2333_p6 = scmp.lt.s32.totalorder %s45_s21, %s45_s21 }
  0x2c   :  { %p2329_p5 = scmp.ne.s32.totalorder %s45_s21, %s2328_s29  ;;  %p2334_p7 = scmp.lt.s32.totalorder %s2328_s29, %s2328_s29 }
  0x2e   :  { %p2335_p8 = por %p2334_p7, %p2333_p6 }
  0x30   :  { %p2336_p9 = pnand %p2335_p8, %p2329_p5 }
  0x32   :  { %2339 = shalt.err (!%p2336_p9)
}
  0x33   :  { %s2375_s0 = smov 64   ;;  %s2376_s30 = smov 4  }
  0x34   :  { %50 = dma.hbm_to_vmem [thread:$0]  %s2733_s3, 2048, %s45_s21, [#allocation6], %s2375_s0, %s2375_s0, %s2376_s30  }
  0x35   :  { %2362 = dma.done.wait [#allocation3], 256  }
  0x36   :  { %2363 = vsyncadd [#allocation3], 4294967040 }
  0x37   :  { %2364 = dma.done.wait [#allocation6], 8192  }
  0x38   :  { %2365 = vsyncadd [#allocation6], 4294959104  ;;  %v2377_v0 = vmov 0   ;;  %v2378_v1 = vmov 0.0   ;;  %v2154_v2 = vld [vmem:[#allocation5 + $0x4] ss:$24 sps:$4 sm:$0xff]   ;;  %v100_v29 = vlaneseq }
  0x39   :  { %275 = vmatprep.mubr.bf16.mxu0 %v2377_v0  ;;  %1987 = vmatprep.subr.bf16.mxu1 %v2378_v1  ;;  %v2156_v3 = vld [vmem:[#allocation5] ss:$24 sps:$4 sm:$0xff]   ;;  %v2157_v4 = vld [vmem:[#allocation5 + $0x34] ss:$24 sps:$4 sm:$0xff]   ;;  %v2159_v5 = vld [vmem:[#allocation5 + $0x30] ss:$24 sps:$4 sm:$0xff]  }
  0x3a   :  { %243 = vmatprep.subr.bf16.mxu0 %v2154_v2  ;;  %v2160_v6 = vld [vmem:[#allocation5 + $0x64] ss:$24 sps:$4 sm:$0xff]   ;;  %v2162_v7 = vld [vmem:[#allocation5 + $0x60] ss:$24 sps:$4 sm:$0xff]   ;;  %v2163_v8 = vld [vmem:[#allocation5 + $0x94] ss:$24 sps:$4 sm:$0xff]  }
  0x3b   :  { %244 = vmatpush1.bf16.msra.mxu0 %v2156_v3  ;;  %v2165_v9 = vld [vmem:[#allocation5 + $0x90] ss:$24 sps:$4 sm:$0xff]   ;;  %v2166_v10 = vld [vmem:[#allocation5 + $0xc4] ss:$24 sps:$4 sm:$0xff]   ;;  %v2168_v13 = vld [vmem:[#allocation5 + $0xc0] ss:$24 sps:$4 sm:$0xff]  }
  0x3c   :  { %245 = vmatprep.subr.bf16.mxu0 %v2157_v4  ;;  %v2178_v11 = vld [vmem:[#allocation5 + $0x8] ss:$24 sps:$4 sm:$0xff]   ;;  %v2179_v12 = vld [vmem:[#allocation5 + $0x38] ss:$24 sps:$4 sm:$0xff]   ;;  %v2169_v14 = vld [vmem:[#allocation5 + $0xf4] ss:$24 sps:$4 sm:$0xff]  }
  0x3d   :  { %1988 = vmatpush3.bf16.msra.mxu1 %v2178_v11  ;;  %v2180_v15 = vld [vmem:[#allocation5 + $0x68] ss:$24 sps:$4 sm:$0xff]   ;;  %v2172_v17 = vld [vmem:[#allocation5 + $0x124] ss:$24 sps:$4 sm:$0xff]   ;;  %v2181_v18 = vld [vmem:[#allocation5 + $0x98] ss:$24 sps:$4 sm:$0xff]  }
  0x3e   :  { %1989 = vmatprep.subr.bf16.mxu1 %v2378_v1  ;;  %v2171_v16 = vld [vmem:[#allocation5 + $0xf0] ss:$24 sps:$4 sm:$0xff]   ;;  %v2174_v19 = vld [vmem:[#allocation5 + $0x120] ss:$24 sps:$4 sm:$0xff]   ;;  %v2175_v20 = vld [vmem:[#allocation5 + $0x154] ss:$24 sps:$4 sm:$0xff]  }
  0x3f   :  { %246 = vmatpush1.bf16.msra.mxu0 %v2159_v5  ;;  %v2182_v21 = vld [vmem:[#allocation5 + $0xc8] ss:$24 sps:$4 sm:$0xff]   ;;  %v2460_v23 = vld [vmem:[#allocation2] sm:$0xff]  ;;  %v2462_v24 = vld [vmem:[#allocation2 + $0x8] sm:$0xff]  ;;  %vm2379_vm0 = vmmov 0   ;;  %v2478_v30 = vshrl.u32 %v100_v29, 7 }
  0x40   :  { %247 = vmatprep.subr.bf16.mxu0 %v2160_v6  ;;  %v2177_v22 = vld [vmem:[#allocation5 + $0x150] ss:$24 sps:$4 sm:$0xff]   ;;  %v65_v26 = vpack.c.bf16 %v2462_v24, %v2460_v23  ;;  %2003 = vmatprep.mubr.msk.bf16.mxu1 %vm2379_vm0, %v2378_v1  ;;  %vm367_vm1 = vcmask 261120   ;;  %vm488_vm2 = vcmask 1043456   ;;  %v2380_v60 = vmov 1966171168  }
  0x41   :  { %1990 = vmatpush3.bf16.msra.mxu1 %v2179_v12  ;;  %v2183_v25 = vld [vmem:[#allocation5 + $0xf8] ss:$24 sps:$4 sm:$0xff]   ;;  %v2184_v27 = vld [vmem:[#allocation5 + $0x128] ss:$24 sps:$4 sm:$0xff]   ;;  %v106_v31 = vsub.s32 1, %v2478_v30  ;;  %v2487_v34 = vsub.s32 0, %v2478_v30  ;;  %v338_v61 = vunpack.c.l.s4 %v2380_v60 }
  0x42   :  { %1991 = vmatprep.subr.bf16.mxu1 %v2378_v1  ;;  %v2185_v28 = vld [vmem:[#allocation5 + $0x158] ss:$24 sps:$4 sm:$0xff]   ;;  %v110_v50 = vsub.s32 2, %v2478_v30  ;;  %vm460_vm3 = vcmask 64512   ;;  %s2382_s11 = smov 32   ;;  %vm1270_vm4 = vcmask 523264  }
  0x43   :  { %248 = vmatpush1.bf16.msra.mxu0 %v2162_v7  ;;  %v98_v32 = vld [vmem:[%s2734_s4] sm:$0x7]  ;;  %v339_v62 = vunpack.c.0.s8 %v338_v61  ;;  %vm1273_vm5 = vcmask 785408   ;;  %s2383_s27 = smov [#allocation8]  }
  0x44   :  { %249 = vmatprep.subr.bf16.mxu0 %v2163_v8  ;;  %v107_v33 = vrot.slane %v98_v32, %v106_v31  ;;  %v103_v40 = vrot.slane %v98_v32, %v2487_v34  ;;  %v111_v51 = vrot.slane %v98_v32, %v110_v50  ;;  %v1852_v2 = vld.sshfl [vmem:[%s2731_s1] sm:$0x11 pattern:$0x75316420]  ;;  %s2381_s1 = smov 96   ;;  %s1815_s28 = sshll.u32 %s2383_s27, 4  ;;  %s1816_s28 = int_to_ptr.vmem [resolvable:$true] %s1815_s28 }
  0x45   :  { %1992 = vmatpush3.bf16.msra.mxu1 %v2180_v15  ;;  %v342_v63 = vsub.s32 %v339_v62, %v2478_v30  ;;  %v336_v5 = vcombine.high %v1852_v2, %v1852_v2  ;;  %v1896_v30 = vld [vmem:[%s2734_s4 + $0x6] ss:$0 sm:$0xff]  ;;  %s2340_s29 = scalar_lea.vmem %s1816_s28, 256  ;;  %p2345_p11 = scmp.lt.s32.totalorder %s1816_s28, %s1816_s28 }
  0x46   :  { %1993 = vmatprep.subr.bf16.mxu1 %v2378_v1  ;;  %p2341_p10 = scmp.ne.s32.totalorder %s1816_s28, %s2340_s29  ;;  %p2346_p12 = scmp.lt.s32.totalorder %s2340_s29, %s2340_s29 }
  0x47   :  { %250 = vmatpush1.bf16.msra.mxu0 %v2165_v9  ;;  %v343_v3 = vrot.slane %v1852_v2, %v342_v63  ;;  %v350_v9 = vrot.slane %v336_v5, %v342_v63 }
  0x48   :  { %251 = vmatprep.subr.bf16.mxu0 %v2166_v10  ;;  %p2347_p13 = por %p2346_p12, %p2345_p11 }
  0x49   :  { %1994 = vmatpush3.bf16.msra.mxu1 %v2181_v18  ;;  %v2523_v4 = vrot.slane %v343_v3, %v2487_v34 }
  0x4a   :  { %1995 = vmatprep.subr.bf16.mxu1 %v2378_v1  ;;  %p2348_p0 = pnand %p2347_p13, %p2341_p10 }
  0x4b   :  { %252 = vmatpush1.bf16.msra.mxu0 %v2168_v13  ;;  %v2528_v13 = vrot.slane %v350_v9, %v2487_v34 }
  0x4c   :  { %253 = vmatprep.subr.bf16.mxu0 %v2169_v14 }
  0x4d   :  { %1996 = vmatpush3.bf16.msra.mxu1 %v2182_v21 }
  0x4e   :  { %1997 = vmatprep.subr.bf16.mxu1 %v2378_v1 }
  0x4f   :  { %254 = vmatpush1.bf16.msra.mxu0 %v2171_v16 }
  0x50   :  { %255 = vmatprep.subr.bf16.mxu0 %v2172_v17 }
  0x51   :  { %1998 = vmatpush3.bf16.msra.mxu1 %v2183_v25 }
  0x52   :  { %1999 = vmatprep.subr.bf16.mxu1 %v2378_v1 }
  0x53   :  { %256 = vmatpush1.bf16.msra.mxu0 %v2174_v19 }
  0x54   :  { %257 = vmatprep.subr.bf16.mxu0 %v2175_v20 }
  0x55   :  { %2000 = vmatpush3.bf16.msra.mxu1 %v2184_v27 }
  0x56   :  { %2001 = vmatprep.subr.bf16.mxu1 %v2378_v1 }
  0x57   :  { %258 = vmatpush1.bf16.msra.mxu0 %v2177_v22 }
  0x58   :  { %2031 = vmatprep.subr.bf16.mxu0 %v2378_v1 }
  0x59   :  { %2002 = vmatpush3.bf16.msra.mxu1 %v2185_v28 }
  0x5a   :  { %276 = vmatmul.mubr.bf16.vlgmr.msra.gmra.mrb[0].mxu0 %v65_v26  ;;  %2007 = vmatprep.subr.bf16.mxu1 %v2378_v1 }
  0x5b   :  { %2033 = vmatprep.mubr.msk.bf16.mxu0 %vm2379_vm0, %v2378_v1 }
  0x5c   :  { %2004 = vmatmul.mubr.bf16.vlgmr.msra.gmra.mrb[0].mxu1 %v65_v26 }
  0x5d   :  { %2009 = vmatprep.mubr.msk.bf16.mxu1 %vm2379_vm0, %v2378_v1 }
 0x12d   :  { %v277_v35 = vpop.f32.mrb[0].mxu0 }
 0x12e   :  { %v279_v36 = vpop.f32.mrb[1].mxu0  ;;  %v278_v44 = vadd.f32 %v277_v35, %v103_v40 }
 0x12f   :  { %v280_v37 = vadd.f32 %v279_v36, %v107_v33  ;;  %v281_v38 = vpop.f32.mrb[2].mxu0  ;;  %v320_v52 = vpop.f32.mrb[0].mxu1 }
 0x130   :  { %v283_v39 = vpop.f32.mrb[3].mxu0  ;;  %v2497_v46 = vpack.c.bf16 %v278_v44, %v278_v44  ;;  %v282_v48 = vadd.f32 %v281_v38, %v103_v40  ;;  %v321_v53 = vadd.f32 %v320_v52, %v111_v51  ;;  %v2005_v54 = vpop.f32.mrb[1].mxu1 }
 0x131   :  { %v2490_v41 = vpack.c.bf16 %v280_v37, %v280_v37  ;;  %v284_v42 = vadd.f32 %v283_v39, %v107_v33  ;;  %v323_v55 = vpop.f32.mrb[2].mxu1 }
 0x132   :  { %v2506_v49 = vpack.c.bf16 %v282_v48, %v282_v48  ;;  %v2513_v56 = vpack.c.bf16 %v321_v53, %v321_v53  ;;  %v324_v57 = vadd.f32 %v323_v55, %v111_v51  ;;  %v2006_v58 = vpop.f32.mrb[3].mxu1 }
 0x133   :  { %v372_v43 = vsel %vm367_vm1, %v2490_v41, 0  ;;  %v2495_v45 = vpack.c.bf16 %v284_v42, %v284_v42 }
 0x134   :  { %2008 = vmatpush3.bf16.xpose.msra.mxu1 %v372_v43  ;;  %v490_v59 = vsel %vm488_vm2, %v2513_v56, 0  ;;  %v2544_v39 = vpack.c.bf16 %v324_v57, %v324_v57 }
 0x135   :  { %2013 = vmatprep.subr.bf16.mxu1 %v2378_v1  ;;  %v418_v47 = vsel %vm367_vm1, %v2495_v45, 0 }
 0x136   :  { %v536_v43 = vsel %vm488_vm2, %v2544_v39, 0 }
 0x13b   :  { %2010 = vmatmul.mubr.msk.bf16.vlgmr.msra.gmra.mrb[4].mxu1 %vm367_vm1, %v2497_v46 }
 0x13c   :  { %2014 = vmatpush3.bf16.xpose.msra.mxu1 %v418_v47  ;;  %2015 = vmatprep.mubr.msk.bf16.mxu1 %vm2379_vm0, %v2378_v1 }
 0x13d   :  { %2019 = vmatprep.subr.bf16.mxu1 %v2378_v1 }
 0x143   :  { %2016 = vmatmul.mubr.msk.bf16.vlgmr.msra.gmra.mrb[8].mxu1 %vm367_vm1, %v2506_v49 }
 0x144   :  { %2021 = vmatprep.mubr.msk.bf16.mxu1 %vm2379_vm0, %v2378_v1  ;;  %2020 = vmatpush3.bf16.msra.mxu1 %v490_v59 }
 0x145   :  { %2025 = vmatprep.subr.bf16.mxu1 %v2378_v1 }
 0x20e   :  { %v408_v6 = vpop.f32.mrb[4].mxu1 }
 0x20f   :  { %v409_v7 = vadd.f32 %v408_v6, %v2523_v4  ;;  %v2011_v8 = vpop.f32.mrb[5].mxu1 }
 0x210   :  { %v411_v10 = vpop.f32.mrb[6].mxu1 }
 0x211   :  { %v2012_v11 = vpop.f32.mrb[7].mxu1  ;;  %v461_v12 = vsel %vm460_vm3, %v409_v7, -inf }
 0x212   :  { %462 = vmax.xlane.f32.xlu0 %v461_v12 }
 0x216   :  { %v454_v14 = vpop.f32.mrb[8].mxu1 }
 0x217   :  { %v455_v15 = vadd.f32 %v454_v14, %v2528_v13  ;;  %v2017_v16 = vpop.f32.mrb[9].mxu1 }
 0x218   :  { %v457_v17 = vpop.f32.mrb[10].mxu1 }
 0x219   :  { %v2018_v18 = vpop.f32.mrb[11].mxu1  ;;  %v464_v19 = vsel %vm460_vm3, %v455_v15, -inf }
 0x21a   :  { %465 = vmax.xlane.f32.xlu0 %v464_v19 }
 0x230   :  { %582 = vrot.lane.b32.xlu0 %v2490_v41, %s2381_s1 }
 0x29f   :  { %v463_v20 = vpop.xlane.xlu0 %462 }
 0x2a0   :  { %v467_v21 = vsub.f32 %v409_v7, %v463_v20 }
 0x2a2   :  { %v469_v22 = vmul.f32 1.442695, %v467_v21 }
 0x2a4   :  { %2234 = vpow2.f32 %v469_v22 }
 0x2a7   :  { %v466_v25 = vpop.xlane.xlu0 %465 }
 0x2a8   :  { %v468_v32 = vsub.f32 %v455_v15, %v466_v25 }
 0x2aa   :  { %v471_v33 = vmul.f32 1.442695, %v468_v32 }
 0x2ab   :  { %v583_v26 = vpop.permute.xlu0 %582 }
 0x2ac   :  { %v588_v27 = vsel %vm367_vm1, %v583_v26, 0  ;;  %2236 = vpow2.f32 %v471_v33 }
 0x2ad   :  { %2032 = vmatpush3.bf16.xpose.msra.mxu0 %v588_v27 }
 0x2ae   :  { %v2235_v28 = vpop.eup %2234  ;;  %2043 = vmatprep.subr.bf16.mxu0 %v2378_v1 }
 0x2af   :  { %v473_v29 = vsel %vm460_vm3, %v2235_v28, 0.0 }
 0x2b0   :  { %474 = vadd.xlane.f32.xlu1 %v473_v29 }
 0x2b6   :  { %v2237_v35 = vpop.eup %2236 }
 0x2b7   :  { %v476_v36 = vsel %vm460_vm3, %v2237_v35, 0.0 }
 0x2c1   :  { %634 = vrot.lane.b32.xlu1 %v2495_v45, %s2381_s1 }
 0x2e5   :  { %477 = vadd.xlane.f32.xlu1 %v476_v36 }
 0x2f6   :  { %579 = vrot.lane.b32.xlu1 %v2497_v46, %s2381_s1 }
 0x2fa   :  { %631 = vrot.lane.b32.xlu1 %v2506_v49, %s2381_s1 }
 0x33d   :  { %v475_v37 = vpop.xlane.xlu1 %474 }
 0x33e   :  { %2238 = vrcp.f32 %v475_v37 }
 0x341   :  { %v635_v44 = vpop.permute.xlu1 %634 }
 0x342   :  { %v640_v53 = vsel %vm367_vm1, %v635_v44, 0 }
 0x348   :  { %v2239_v38 = vpop.eup %2238 }
 0x349   :  { %v481_v40 = vmul.f32 %v2239_v38, %v2235_v28 }
 0x34b   :  { %v483_v42 = vpack.c.bf16 %v481_v40, %v481_v40 }
 0x34d   :  { %2022 = vmatmul.mubr.msk.bf16.vlgmr.msra.gmra.mrb[12].mxu1 %vm460_vm3, %v483_v42 }
 0x34e   :  { %2026 = vmatpush3.bf16.msra.mxu1 %v536_v43  ;;  %2027 = vmatprep.mubr.msk.bf16.mxu1 %vm2379_vm0, %v2378_v1 }
 0x34f   :  { %2037 = vmatprep.subr.bf16.mxu1 %v2378_v1 }
 0x372   :  { %v478_v47 = vpop.xlane.xlu1 %477 }
 0x373   :  { %2240 = vrcp.f32 %v478_v47 }
 0x376   :  { %v580_v48 = vpop.permute.xlu1 %579 }
 0x377   :  { %2034 = vmatmul.mubr.msk.bf16.vlgmr.msra.gmra.mrb[4].mxu0 %vm367_vm1, %v580_v48 }
 0x378   :  { %2045 = vmatprep.mubr.msk.bf16.mxu0 %vm2379_vm0, %v2378_v1 }
 0x37a   :  { %v632_v54 = vpop.permute.xlu1 %631 }
 0x37d   :  { %v2241_v50 = vpop.eup %2240 }
 0x37e   :  { %v482_v51 = vmul.f32 %v2241_v50, %v2237_v35 }
 0x380   :  { %v484_v52 = vpack.c.bf16 %v482_v51, %v482_v51 }
 0x382   :  { %2028 = vmatmul.mubr.msk.bf16.vlgmr.msra.gmra.mrb[16].mxu1 %vm460_vm3, %v484_v52 }
 0x383   :  { %2038 = vmatpush3.bf16.xpose.msra.mxu1 %v640_v53  ;;  %2039 = vmatprep.mubr.msk.bf16.mxu1 %vm2379_vm0, %v2378_v1 }
 0x384   :  { %2049 = vmatprep.subr.bf16.mxu1 %v2378_v1 }
 0x38a   :  { %2040 = vmatmul.mubr.msk.bf16.vlgmr.msra.gmra.mrb[20].mxu1 %vm367_vm1, %v632_v54 }
 0x38b   :  { %2051 = vmatprep.mubr.msk.bf16.mxu1 %vm2379_vm0, %v2378_v1 }
 0x420   :  { %v2563_v55 = vpop.f32.mrb[12].mxu1 }
 0x421   :  { %v2023_v57 = vpop.f32.mrb[13].mxu1 }
 0x422   :  { %v529_v58 = vpop.f32.mrb[14].mxu1 }
 0x423   :  { %v2024_v59 = vpop.f32.mrb[15].mxu1 }
 0x44a   :  { %v624_v60 = vpop.f32.mrb[4].mxu0 }
 0x44b   :  { %v625_v61 = vadd.f32 %v624_v60, %v2523_v4  ;;  %v2035_v62 = vpop.f32.mrb[5].mxu0 }
 0x44c   :  { %v627_v63 = vpop.f32.mrb[6].mxu0 }
 0x44d   :  { %v2036_v2 = vpop.f32.mrb[7].mxu0  ;;  %v682_v3 = vsel %vm460_vm3, %v625_v61, -inf }
 0x44e   :  { %683 = vmax.xlane.f32.xlu0 %v682_v3 }
 0x455   :  { %v2567_v5 = vpop.f32.mrb[16].mxu1 }
 0x456   :  { %v2029_v6 = vpop.f32.mrb[17].mxu1 }
 0x457   :  { %v575_v7 = vpop.f32.mrb[18].mxu1 }
 0x458   :  { %v2030_v8 = vpop.f32.mrb[19].mxu1 }
 0x45d   :  { %v676_v9 = vpop.f32.mrb[20].mxu1 }
 0x45e   :  { %v677_v10 = vadd.f32 %v676_v9, %v2528_v13  ;;  %v2041_v11 = vpop.f32.mrb[21].mxu1 }
 0x45f   :  { %v679_v12 = vpop.f32.mrb[22].mxu1 }
 0x460   :  { %v2042_v14 = vpop.f32.mrb[23].mxu1  ;;  %v685_v15 = vsel %vm460_vm3, %v677_v10, -inf }
 0x461   :  { %686 = vmax.xlane.f32.xlu1 %v685_v15 }
 0x472   :  { %756 = vrot.lane.b32.xlu1 %v2544_v39, %s2381_s1 }
 0x476   :  { %806 = vrot.lane.b32.xlu1 %v2490_v41, %s2375_s0 }
 0x47a   :  { %856 = vrot.lane.b32.xlu1 %v2495_v45, %s2375_s0 }
 0x47e   :  { %854 = vrot.lane.b32.xlu1 %v2506_v49, %s2375_s0 }
 0x4db   :  { %v684_v16 = vpop.xlane.xlu0 %683 }
 0x4dc   :  { %v688_v17 = vsub.f32 %v625_v61, %v684_v16 }
 0x4de   :  { %v690_v18 = vmul.f32 1.442695, %v688_v17 }
 0x4e0   :  { %2242 = vpow2.f32 %v690_v18 }
 0x4ea   :  { %v2243_v19 = vpop.eup %2242 }
 0x4eb   :  { %v694_v20 = vsel %vm460_vm3, %v2243_v19, 0.0 }
 0x4ec   :  { %695 = vadd.xlane.f32.xlu0 %v694_v20 }
 0x4ee   :  { %v687_v21 = vpop.xlane.xlu1 %686 }
 0x4ef   :  { %v689_v22 = vsub.f32 %v677_v10, %v687_v21 }
 0x4f1   :  { %v692_v25 = vmul.f32 1.442695, %v689_v22 }
 0x4f2   :  { %v757_v26 = vpop.permute.xlu1 %756 }
 0x4f3   :  { %2244 = vpow2.f32 %v692_v25  ;;  %v762_v27 = vsel %vm488_vm2, %v757_v26, 0 }
 0x4f4   :  { %2050 = vmatpush3.bf16.msra.mxu1 %v762_v27 }
 0x4f5   :  { %2061 = vmatprep.subr.bf16.mxu1 %v2378_v1 }
 0x4f6   :  { %v807_v40 = vpop.permute.xlu1 %806 }
 0x4f7   :  { %v812_v48 = vsel %vm367_vm1, %v807_v40, 0 }
 0x4fa   :  { %v857_v47 = vpop.permute.xlu1 %856 }
 0x4fb   :  { %v862_v51 = vsel %vm367_vm1, %v857_v47, 0 }
 0x4fd   :  { %v2245_v28 = vpop.eup %2244 }
 0x4fe   :  { %v697_v29 = vsel %vm460_vm3, %v2245_v28, 0.0  ;;  %v855_v53 = vpop.permute.xlu1 %854 }
 0x4ff   :  { %698 = vadd.xlane.f32.xlu0 %v697_v29 }
 0x515   :  { %707 = vrot.lane.b32.xlu0 %v2513_v56, %s2381_s1 }
 0x519   :  { %804 = vrot.lane.b32.xlu0 %v2497_v46, %s2375_s0 }
 0x579   :  { %v696_v32 = vpop.xlane.xlu0 %695 }
 0x57a   :  { %2246 = vrcp.f32 %v696_v32 }
 0x584   :  { %v2247_v33 = vpop.eup %2246 }
 0x585   :  { %v702_v36 = vmul.f32 %v2247_v33, %v2243_v19 }
 0x587   :  { %v704_v42 = vpack.c.bf16 %v702_v36, %v702_v36 }
 0x58c   :  { %v699_v35 = vpop.xlane.xlu0 %698 }
 0x58d   :  { %2248 = vrcp.f32 %v699_v35 }
 0x590   :  { %v708_v37 = vpop.permute.xlu0 %707 }
 0x591   :  { %v713_v38 = vsel %vm488_vm2, %v708_v37, 0 }
 0x592   :  { %2044 = vmatpush3.bf16.msra.mxu0 %v713_v38 }
 0x593   :  { %2055 = vmatprep.subr.bf16.mxu0 %v2378_v1 }
 0x594   :  { %v805_v52 = vpop.permute.xlu0 %804 }
 0x595   :  { %2046 = vmatmul.mubr.msk.bf16.vlgmr.msra.gmra.mrb[8].mxu0 %vm460_vm3, %v704_v42 }
 0x596   :  { %2057 = vmatprep.mubr.msk.bf16.mxu0 %vm2379_vm0, %v2378_v1 }
 0x597   :  { %v2249_v43 = vpop.eup %2248 }
 0x598   :  { %v703_v44 = vmul.f32 %v2249_v43, %v2245_v28 }
 0x59a   :  { %v705_v50 = vpack.c.bf16 %v703_v44, %v703_v44 }
 0x59b   :  { %2056 = vmatpush3.bf16.xpose.msra.mxu0 %v812_v48 }
 0x59c   :  { %2052 = vmatmul.mubr.msk.bf16.vlgmr.msra.gmra.mrb[24].mxu1 %vm460_vm3, %v705_v50  ;;  %2067 = vmatprep.subr.bf16.mxu0 %v2378_v1 }
 0x59d   :  { %2062 = vmatpush3.bf16.xpose.msra.mxu1 %v862_v51  ;;  %2063 = vmatprep.mubr.msk.bf16.mxu1 %vm2379_vm0, %v2378_v1 }
 0x59e   :  { %2073 = vmatprep.subr.bf16.mxu1 %v2378_v1 }
 0x5a2   :  { %2058 = vmatmul.mubr.msk.bf16.vlgmr.msra.gmra.mrb[12].mxu0 %vm367_vm1, %v805_v52 }
 0x5a3   :  { %2069 = vmatprep.mubr.msk.bf16.mxu0 %vm2379_vm0, %v2378_v1 }
 0x5a4   :  { %2064 = vmatmul.mubr.msk.bf16.vlgmr.msra.gmra.mrb[28].mxu1 %vm367_vm1, %v855_v53 }
 0x5a5   :  { %2075 = vmatprep.mubr.msk.bf16.mxu1 %vm2379_vm0, %v2378_v1 }
 0x668   :  { %v2605_v54 = vpop.f32.mrb[8].mxu0 }
 0x669   :  { %v2047_v57 = vpop.f32.mrb[9].mxu0 }
 0x66a   :  { %v752_v58 = vpop.f32.mrb[10].mxu0 }
 0x66b   :  { %v2048_v59 = vpop.f32.mrb[11].mxu0 }
 0x66f   :  { %v2607_v60 = vpop.f32.mrb[24].mxu1 }
 0x670   :  { %v2139_v61 = vpack.i.bf16 %v2607_v60, %v2605_v54  ;;  %v2053_v62 = vpop.f32.mrb[25].mxu1 }
 0x671   :  { %v801_v63 = vpop.f32.mrb[26].mxu1 }
 0x672   :  { %v2054_v2 = vpop.f32.mrb[27].mxu1 }
 0x675   :  { %v848_v3 = vpop.f32.mrb[12].mxu0 }
 0x676   :  { %v849_v6 = vadd.f32 %v848_v3, %v2523_v4  ;;  %v2059_v7 = vpop.f32.mrb[13].mxu0 }
 0x677   :  { %v851_v8 = vpop.f32.mrb[14].mxu0  ;;  %v898_v9 = vpop.f32.mrb[28].mxu1 }
 0x678   :  { %v899_v10 = vadd.f32 %v898_v9, %v2528_v13  ;;  %v2060_v11 = vpop.f32.mrb[15].mxu0  ;;  %v2065_v12 = vpop.f32.mrb[29].mxu1  ;;  %v904_v14 = vsel %vm460_vm3, %v849_v6, -inf }
 0x679   :  { %905 = vmax.xlane.f32.xlu0 %v904_v14  ;;  %v901_v15 = vpop.f32.mrb[30].mxu1 }
 0x67a   :  { %v2066_v16 = vpop.f32.mrb[31].mxu1  ;;  %v907_v17 = vsel %vm460_vm3, %v899_v10, -inf }
 0x67b   :  { %908 = vmax.xlane.f32.xlu1 %v907_v17 }
 0x68c   :  { %976 = vrot.lane.b32.xlu1 %v2544_v39, %s2375_s0 }
 0x690   :  { %1026 = vrot.lane.b32.xlu1 %v2490_v41, %s2382_s11 }
 0x694   :  { %1076 = vrot.lane.b32.xlu1 %v2495_v45, %s2382_s11 }
 0x698   :  { %1074 = vrot.lane.b32.xlu1 %v2506_v49, %s2382_s11 }
 0x706   :  { %v906_v18 = vpop.xlane.xlu0 %905 }
 0x707   :  { %v910_v19 = vsub.f32 %v849_v6, %v906_v18 }
 0x708   :  { %v909_v20 = vpop.xlane.xlu1 %908 }
 0x709   :  { %v912_v21 = vmul.f32 1.442695, %v910_v19  ;;  %v911_v22 = vsub.f32 %v899_v10, %v909_v20 }
 0x70b   :  { %2250 = vpow2.f32 %v912_v21  ;;  %v914_v25 = vmul.f32 1.442695, %v911_v22 }
 0x70c   :  { %v977_v26 = vpop.permute.xlu1 %976 }
 0x70d   :  { %2252 = vpow2.f32 %v914_v25  ;;  %v982_v27 = vsel %vm488_vm2, %v977_v26, 0 }
 0x70e   :  { %2074 = vmatpush3.bf16.msra.mxu1 %v982_v27 }
 0x70f   :  { %2085 = vmatprep.subr.bf16.mxu1 %v2378_v1 }
 0x710   :  { %v1027_v37 = vpop.permute.xlu1 %1026 }
 0x714   :  { %v1077_v44 = vpop.permute.xlu1 %1076 }
 0x715   :  { %v2251_v41 = vpop.eup %2250  ;;  %v1082_v48 = vsel %vm367_vm1, %v1077_v44, 0  ;;  %v2193_v44 = vld [vmem:[#allocation5 + $0x15c] ss:$24 sps:$4 sm:$0xff]  }
 0x716   :  { %v916_v45 = vsel %vm460_vm3, %v2251_v41, 0.0 }
 0x717   :  { %v2253_v28 = vpop.eup %2252  ;;  %917 = vadd.xlane.f32.xlu0 %v916_v45 }
 0x718   :  { %v919_v49 = vsel %vm460_vm3, %v2253_v28, 0.0  ;;  %v1075_v51 = vpop.permute.xlu1 %1074 }
 0x71b   :  { %920 = vadd.xlane.f32.xlu0 %v919_v49 }
 0x731   :  { %928 = vrot.lane.b32.xlu0 %v2513_v56, %s2375_s0 }
 0x735   :  { %1024 = vrot.lane.b32.xlu0 %v2497_v46, %s2382_s11  ;;  %v1032_v46 = vsel %vm367_vm1, %v1027_v37, 0  ;;  %v2187_v37 = vld [vmem:[#allocation5 + $0x3c] ss:$24 sps:$4 sm:$0xff]  }
 0x7a4   :  { %v918_v29 = vpop.xlane.xlu0 %917 }
 0x7a5   :  { %2254 = vrcp.f32 %v918_v29 }
 0x7a8   :  { %v921_v32 = vpop.xlane.xlu0 %920 }
 0x7a9   :  { %2256 = vrcp.f32 %v921_v32 }
 0x7ac   :  { %v929_v33 = vpop.permute.xlu0 %928 }
 0x7ad   :  { %v934_v35 = vsel %vm488_vm2, %v929_v33, 0 }
 0x7ae   :  { %2068 = vmatpush3.bf16.msra.mxu0 %v934_v35 }
 0x7af   :  { %v2255_v36 = vpop.eup %2254  ;;  %2079 = vmatprep.subr.bf16.mxu0 %v2378_v1 }
 0x7b0   :  { %v924_v38 = vmul.f32 %v2255_v36, %v2251_v41  ;;  %v1025_v50 = vpop.permute.xlu0 %1024  ;;  %v2186_v36 = vld [vmem:[#allocation5 + $0xc] ss:$24 sps:$4 sm:$0xff]  }
 0x7b2   :  { %v926_v40 = vpack.c.bf16 %v924_v38, %v924_v38  ;;  %v2188_v38 = vld [vmem:[#allocation5 + $0x6c] ss:$24 sps:$4 sm:$0xff]  }
 0x7b3   :  { %v2257_v42 = vpop.eup %2256 }
 0x7b4   :  { %v925_v43 = vmul.f32 %v2257_v42, %v2253_v28  ;;  %2070 = vmatmul.mubr.msk.bf16.vlgmr.msra.gmra.mrb[16].mxu0 %vm460_vm3, %v926_v40  ;;  %v2189_v40 = vld [vmem:[#allocation5 + $0x9c] ss:$24 sps:$4 sm:$0xff]   ;;  %v2190_v42 = vld [vmem:[#allocation5 + $0xcc] ss:$24 sps:$4 sm:$0xff]  }
 0x7b5   :  { %2081 = vmatprep.mubr.msk.bf16.mxu0 %vm2379_vm0, %v2378_v1 }
 0x7b6   :  { %v927_v47 = vpack.c.bf16 %v925_v43, %v925_v43  ;;  %v2191_v43 = vld [vmem:[#allocation5 + $0xfc] ss:$24 sps:$4 sm:$0xff]  }
 0x7b7   :  { %2080 = vmatpush3.bf16.xpose.msra.mxu0 %v1032_v46 }
 0x7b8   :  { %2076 = vmatmul.mubr.msk.bf16.vlgmr.msra.gmra.mrb[32].mxu1 %vm460_vm3, %v927_v47  ;;  %2091 = vmatprep.subr.bf16.mxu0 %v2378_v1 }
 0x7b9   :  { %2086 = vmatpush3.bf16.xpose.msra.mxu1 %v1082_v48  ;;  %2087 = vmatprep.mubr.msk.bf16.mxu1 %vm2379_vm0, %v2378_v1 }
 0x7ba   :  { %2097 = vmatprep.subr.bf16.mxu1 %v2378_v1 }
 0x7be   :  { %2082 = vmatmul.mubr.msk.bf16.vlgmr.msra.gmra.mrb[20].mxu0 %vm367_vm1, %v1025_v50 }
 0x7bf   :  { %2093 = vmatprep.mubr.msk.bf16.mxu0 %vm2379_vm0, %v2378_v1 }
 0x7c0   :  { %2088 = vmatmul.mubr.msk.bf16.vlgmr.msra.gmra.mrb[36].mxu1 %vm367_vm1, %v1075_v51 }
 0x7c1   :  { %2099 = vmatprep.mubr.msk.bf16.mxu1 %vm2379_vm0, %v2378_v1 }
 0x887   :  { %v970_v52 = vpop.f32.mrb[16].mxu0 }
 0x888   :  { %v2071_v53 = vpop.f32.mrb[17].mxu0 }
 0x889   :  { %v973_v57 = vpop.f32.mrb[18].mxu0 }
 0x88a   :  { %v2072_v58 = vpop.f32.mrb[19].mxu0 }
 0x88b   :  { %v1018_v59 = vpop.f32.mrb[32].mxu1 }
 0x88c   :  { %v2144_v62 = vpack.i.bf16 %v1018_v59, %v970_v52  ;;  %v2077_v63 = vpop.f32.mrb[33].mxu1 }
 0x88d   :  { %v1021_v2 = vpop.f32.mrb[34].mxu1 }
 0x88e   :  { %v2078_v3 = vpop.f32.mrb[35].mxu1 }
 0x891   :  { %v1068_v6 = vpop.f32.mrb[20].mxu0 }
 0x892   :  { %v1069_v7 = vadd.f32 %v1068_v6, %v2523_v4  ;;  %v2083_v8 = vpop.f32.mrb[21].mxu0 }
 0x893   :  { %v1071_v9 = vpop.f32.mrb[22].mxu0  ;;  %v1118_v10 = vpop.f32.mrb[36].mxu1 }
 0x894   :  { %v1119_v11 = vadd.f32 %v1118_v10, %v2528_v13  ;;  %v2084_v12 = vpop.f32.mrb[23].mxu0  ;;  %v2089_v14 = vpop.f32.mrb[37].mxu1  ;;  %v1124_v15 = vsel %vm460_vm3, %v1069_v7, -inf }
 0x895   :  { %1125 = vmax.xlane.f32.xlu0 %v1124_v15  ;;  %v1121_v16 = vpop.f32.mrb[38].mxu1 }
 0x896   :  { %v2090_v17 = vpop.f32.mrb[39].mxu1  ;;  %v1127_v18 = vsel %vm460_vm3, %v1119_v11, -inf }
 0x897   :  { %1128 = vmax.xlane.f32.xlu1 %v1127_v18  ;;  %v1869_v17 = vld [vmem:[%s2734_s4 + $0x3] ss:$0 sm:$0xff] }
 0x8a8   :  { %1196 = vrot.lane.b32.xlu1 %v2544_v39, %s2382_s11 }
 0x8ac   :  { %2140 = vrot.lane.b32.xlu1 %v2139_v61, %s2382_s11 }
 0x8b0   :  { %2145 = vrot.lane.b32.xlu1 %v2144_v62, %s2375_s0 }
 0x922   :  { %v1126_v4 = vpop.xlane.xlu0 %1125 }
 0x923   :  { %v1130_v13 = vsub.f32 %v1069_v7, %v1126_v4 }
 0x924   :  { %v1129_v19 = vpop.xlane.xlu1 %1128 }
 0x925   :  { %v1132_v20 = vmul.f32 1.442695, %v1130_v13  ;;  %v1131_v21 = vsub.f32 %v1119_v11, %v1129_v19 }
 0x927   :  { %2258 = vpow2.f32 %v1132_v20  ;;  %v1134_v22 = vmul.f32 1.442695, %v1131_v21 }
 0x928   :  { %v1197_v25 = vpop.permute.xlu1 %1196 }
 0x929   :  { %2260 = vpow2.f32 %v1134_v22  ;;  %v1202_v26 = vsel %vm488_vm2, %v1197_v25, 0  ;;  %v2194_v22 = vld [vmem:[#allocation5 + $0x10] ss:$24 sps:$4 sm:$0xff]   ;;  %v2196_v25 = vld [vmem:[#allocation5 + $0x14] ss:$24 sps:$4 sm:$0xff]  }
 0x92a   :  { %2098 = vmatpush3.bf16.msra.mxu1 %v1202_v26  ;;  %v2199_v26 = vld [vmem:[#allocation5 + $0x44] ss:$24 sps:$4 sm:$0xff]  }
 0x92b   :  { %1541 = vmatprep.subr.bf16.mxu1 %v2196_v25 }
 0x92c   :  { %v2141_v59 = vpop.permute.xlu1 %2140 }
 0x92d   :  { %v2143_v63 = vunpack.i.h.bf16 %v2141_v59  ;;  %v2142_v2 = vunpack.i.l.bf16 %v2141_v59 }
 0x92f   :  { %v1269_v7 = vsel %vm367_vm1, %v2567_v5, %v2143_v63  ;;  %v1268_v8 = vsel %vm367_vm1, %v2563_v55, %v2142_v2 }
 0x930   :  { %v2146_v62 = vpop.permute.xlu1 %2145 }
 0x931   :  { %v2259_v39 = vpop.eup %2258  ;;  %v2148_v3 = vunpack.i.h.bf16 %v2146_v62  ;;  %v2147_v6 = vunpack.i.l.bf16 %v2146_v62 }
 0x932   :  { %v1136_v27 = vsel %vm460_vm3, %v2259_v39, 0.0 }
 0x933   :  { %v2261_v41 = vpop.eup %2260  ;;  %1137 = vadd.xlane.f32.xlu0 %v1136_v27  ;;  %v1271_v11 = vsel %vm1270_vm4, %v1268_v8, %v2147_v6  ;;  %v1272_v12 = vsel %vm1270_vm4, %v1269_v7, %v2148_v3  ;;  %v1878_v7 = vld [vmem:[%s2734_s4 + $0x7] ss:$0 sm:$0xff] }
 0x934   :  { %v1139_v54 = vsel %vm460_vm3, %v2261_v41, 0.0 }
 0x937   :  { %1140 = vadd.xlane.f32.xlu0 %v1139_v54 }
 0x94d   :  { %1148 = vrot.lane.b32.xlu0 %v2513_v56, %s2382_s11 }
 0x9c0   :  { %v1138_v60 = vpop.xlane.xlu0 %1137 }
 0x9c1   :  { %2262 = vrcp.f32 %v1138_v60 }
 0x9c4   :  { %v1141_v61 = vpop.xlane.xlu0 %1140 }
 0x9c5   :  { %2264 = vrcp.f32 %v1141_v61 }
 0x9c8   :  { %v1149_v45 = vpop.permute.xlu0 %1148 }
 0x9c9   :  { %v1154_v28 = vsel %vm488_vm2, %v1149_v45, 0 }
 0x9ca   :  { %2092 = vmatpush3.bf16.msra.mxu0 %v1154_v28  ;;  %v2202_v28 = vld [vmem:[#allocation5 + $0x74] ss:$24 sps:$4 sm:$0xff]  }
 0x9cb   :  { %v2263_v49 = vpop.eup %2262  ;;  %2103 = vmatprep.subr.bf16.mxu0 %v2378_v1 }
 0x9cc   :  { %v1144_v29 = vmul.f32 %v2263_v49, %v2259_v39  ;;  %v2197_v39 = vld [vmem:[#allocation5 + $0x40] ss:$24 sps:$4 sm:$0xff]   ;;  %v2200_v49 = vld [vmem:[#allocation5 + $0x70] ss:$24 sps:$4 sm:$0xff]  }
 0x9ce   :  { %v1146_v32 = vpack.c.bf16 %v1144_v29, %v1144_v29  ;;  %v2205_v29 = vld [vmem:[#allocation5 + $0xa4] ss:$24 sps:$4 sm:$0xff]  }
 0x9cf   :  { %v2265_v33 = vpop.eup %2264 }
 0x9d0   :  { %v1145_v35 = vmul.f32 %v2265_v33, %v2261_v41  ;;  %2094 = vmatmul.mubr.msk.bf16.vlgmr.msra.gmra.mrb[24].mxu0 %vm460_vm3, %v1146_v32  ;;  %v2203_v32 = vld [vmem:[#allocation5 + $0xa0] ss:$24 sps:$4 sm:$0xff]   ;;  %v2208_v33 = vld [vmem:[#allocation5 + $0xd4] ss:$24 sps:$4 sm:$0xff]  }
 0x9d1   :  { %2119 = vmatprep.mubr.msk.bf16.mxu0 %vm2379_vm0, %v2378_v1  ;;  %2104 = vmatpush3.bf16.msra.mxu0 %v2186_v36  ;;  %v2209_v36 = vld [vmem:[#allocation5 + $0x100] ss:$24 sps:$4 sm:$0xff]  }
 0x9d2   :  { %v1147_v56 = vpack.c.bf16 %v1145_v35, %v1145_v35  ;;  %2105 = vmatprep.subr.bf16.mxu0 %v2378_v1  ;;  %v2206_v35 = vld [vmem:[#allocation5 + $0xd0] ss:$24 sps:$4 sm:$0xff]  }
 0x9d4   :  { %2100 = vmatmul.mubr.msk.bf16.vlgmr.msra.gmra.mrb[40].mxu1 %vm460_vm3, %v1147_v56  ;;  %v2211_v56 = vld [vmem:[#allocation5 + $0x104] ss:$24 sps:$4 sm:$0xff]  }
 0x9d5   :  { %1573 = vmatprep.mubr.bf16.mxu1 %v2377_v0  ;;  %2106 = vmatpush3.bf16.msra.mxu0 %v2187_v37  ;;  %v2192_v0 = vld [vmem:[#allocation5 + $0x12c] ss:$24 sps:$4 sm:$0xff]  }
 0x9d6   :  { %2107 = vmatprep.subr.bf16.mxu0 %v2378_v1  ;;  %1542 = vmatpush1.bf16.msra.mxu1 %v2194_v22  ;;  %v2214_v37 = vld [vmem:[#allocation5 + $0x134] ss:$24 sps:$4 sm:$0xff]  }
 0x9d7   :  { %1543 = vmatprep.subr.bf16.mxu1 %v2199_v26 }
 0x9d9   :  { %2108 = vmatpush3.bf16.msra.mxu0 %v2188_v38  ;;  %v2212_v38 = vld [vmem:[#allocation5 + $0x130] ss:$24 sps:$4 sm:$0xff]  }
 0x9da   :  { %2109 = vmatprep.subr.bf16.mxu0 %v2378_v1  ;;  %1544 = vmatpush1.bf16.msra.mxu1 %v2197_v39 }
 0x9db   :  { %1545 = vmatprep.subr.bf16.mxu1 %v2202_v28 }
 0x9dd   :  { %2110 = vmatpush3.bf16.msra.mxu0 %v2189_v40  ;;  %v2217_v40 = vld [vmem:[#allocation5 + $0x164] ss:$24 sps:$4 sm:$0xff]  }
 0x9de   :  { %2111 = vmatprep.subr.bf16.mxu0 %v2378_v1  ;;  %1546 = vmatpush1.bf16.msra.mxu1 %v2200_v49 }
 0x9df   :  { %1547 = vmatprep.subr.bf16.mxu1 %v2205_v29 }
 0x9e1   :  { %2112 = vmatpush3.bf16.msra.mxu0 %v2190_v42  ;;  %v2215_v42 = vld [vmem:[#allocation5 + $0x160] ss:$24 sps:$4 sm:$0xff]  }
 0x9e2   :  { %2113 = vmatprep.subr.bf16.mxu0 %v2378_v1  ;;  %1548 = vmatpush1.bf16.msra.mxu1 %v2203_v32 }
 0x9e3   :  { %1549 = vmatprep.subr.bf16.mxu1 %v2208_v33 }
 0x9e5   :  { %2114 = vmatpush3.bf16.msra.mxu0 %v2191_v43  ;;  %v2218_v43 = vld [vmem:[#allocation7 + $0x40] sm:$0xff]  }
 0x9e6   :  { %2115 = vmatprep.subr.bf16.mxu0 %v2378_v1  ;;  %1550 = vmatpush1.bf16.msra.mxu1 %v2206_v35 }
 0x9e7   :  { %1551 = vmatprep.subr.bf16.mxu1 %v2211_v56 }
 0x9e9   :  { %2116 = vmatpush3.bf16.msra.mxu0 %v2192_v0  ;;  %v2219_v0 = vld [vmem:[#allocation7] sm:$0xff]  }
 0x9ea   :  { %2117 = vmatprep.subr.bf16.mxu0 %v2378_v1  ;;  %1552 = vmatpush1.bf16.msra.mxu1 %v2209_v36 }
 0x9eb   :  { %1553 = vmatprep.subr.bf16.mxu1 %v2214_v37 }
 0x9ed   :  { %2118 = vmatpush3.bf16.msra.mxu0 %v2193_v44  ;;  %v2220_v44 = vld [vmem:[#allocation7 + $0x48] sm:$0xff]  }
 0x9ee   :  { %1554 = vmatpush1.bf16.msra.mxu1 %v2212_v38  ;;  %1965 = vmatprep.subr.bf16.mxu0 %v2218_v43 }
 0x9ef   :  { %1555 = vmatprep.subr.bf16.mxu1 %v2217_v40 }
 0x9f2   :  { %1556 = vmatpush1.bf16.msra.mxu1 %v2215_v42 }
 0xaa3   :  { %v1190_v46 = vpop.f32.mrb[24].mxu0 }
 0xaa4   :  { %v2095_v47 = vpop.f32.mrb[25].mxu0 }
 0xaa5   :  { %v1193_v48 = vpop.f32.mrb[26].mxu0  ;;  %v2222_v47 = vld [vmem:[#allocation7 + $0x50] sm:$0xff]  }
 0xaa6   :  { %v2096_v50 = vpop.f32.mrb[27].mxu0  ;;  %v2223_v48 = vld [vmem:[#allocation7 + $0x10] sm:$0xff]  }
 0xaa7   :  { %v1238_v51 = vpop.f32.mrb[40].mxu1  ;;  %v2224_v50 = vld [vmem:[#allocation7 + $0x58] sm:$0xff]  }
 0xaa8   :  { %v2149_v52 = vpack.i.bf16 %v1238_v51, %v1190_v46  ;;  %v2101_v53 = vpop.f32.mrb[41].mxu1  ;;  %v2221_v46 = vld [vmem:[#allocation7 + $0x8] sm:$0xff]   ;;  %v2225_v51 = vld [vmem:[#allocation7 + $0x18] sm:$0xff]  }
 0xaa9   :  { %v1241_v57 = vpop.f32.mrb[42].mxu1  ;;  %v2227_v53 = vld [vmem:[#allocation7 + $0x20] sm:$0xff]  }
 0xaaa   :  { %2150 = vrot.lane.b32.xlu0 %v2149_v52, %s2381_s1  ;;  %v2102_v58 = vpop.f32.mrb[43].mxu1  ;;  %v2226_v52 = vld [vmem:[#allocation7 + $0x60] sm:$0xff]   ;;  %v2228_v57 = vld [vmem:[#allocation7 + $0x68] sm:$0xff]  }
 0xb1c   :  { %v2151_v1 = vpop.permute.xlu0 %2150 }
 0xb1d   :  { %v2153_v9 = vunpack.i.h.bf16 %v2151_v1  ;;  %v2152_v10 = vunpack.i.l.bf16 %v2151_v1 }
 0xb1f   :  { %v1275_v14 = vsel %vm1273_vm5, %v1272_v12, %v2153_v9  ;;  %v1274_v15 = vsel %vm1273_vm5, %v1271_v11, %v2152_v10  ;;  %v1879_v11 = vld [vmem:[%s2734_s4 + $0x8] ss:$0 sm:$0xff] }
 0xb20   :  { %v1292_v16 = vpack.c.bf16 %v1275_v14, %v1274_v15 }
 0xb22   :  { %2120 = vmatmul.mubr.bf16.vlgmr.msra.gmra.mrb[28].mxu0 %v1292_v16 }
 0xb23   :  { %1966 = vmatpush3.bf16.msra.mxu0 %v2219_v0 }
 0xb24   :  { %1967 = vmatprep.subr.bf16.mxu0 %v2220_v44 }
 0xb27   :  { %1968 = vmatpush3.bf16.msra.mxu0 %v2221_v46 }
 0xb28   :  { %1969 = vmatprep.subr.bf16.mxu0 %v2222_v47 }
 0xb2b   :  { %1970 = vmatpush3.bf16.msra.mxu0 %v2223_v48 }
 0xb2c   :  { %1971 = vmatprep.subr.bf16.mxu0 %v2224_v50 }
 0xb2f   :  { %1972 = vmatpush3.bf16.msra.mxu0 %v2225_v51 }
 0xb30   :  { %1973 = vmatprep.subr.bf16.mxu0 %v2226_v52 }
 0xb33   :  { %1974 = vmatpush3.bf16.msra.mxu0 %v2227_v53 }
 0xb34   :  { %1975 = vmatprep.subr.bf16.mxu0 %v2228_v57 }
 0xbf5   :  { %v1382_v18 = vpop.f32.mrb[28].mxu0 }
 0xbf6   :  { %v1383_v4 = vadd.f32 %v1869_v17, %v1382_v18  ;;  %v2121_v13 = vpop.f32.mrb[29].mxu0  ;;  %v2230_v18 = vld [vmem:[#allocation7 + $0x70] sm:$0xff]  }
 0xbf7   :  { %v1385_v19 = vpop.f32.mrb[30].mxu0  ;;  %v2232_v13 = vld [vmem:[#allocation7 + $0x78] sm:$0xff]  }
 0xbf8   :  { %v1386_v5 = vadd.f32 %v1869_v17, %v1385_v19  ;;  %v2122_v20 = vpop.f32.mrb[31].mxu0  ;;  %v1389_v55 = vadd.f32 %v1383_v4, %v2460_v23  ;;  %v2229_v17 = vld [vmem:[#allocation7 + $0x28] sm:$0xff]   ;;  %v2231_v4 = vld [vmem:[#allocation7 + $0x30] sm:$0xff]   ;;  %v2233_v19 = vld [vmem:[#allocation7 + $0x38] sm:$0xff]  }
 0xbf9   :  { %1976 = vmatpush3.bf16.msra.mxu0 %v2229_v17 }
 0xbfa   :  { %1393 = vadd.xlane.f32.xlu1 %v1389_v55  ;;  %v1390_v21 = vadd.f32 %v1386_v5, %v2462_v24  ;;  %1977 = vmatprep.subr.bf16.mxu0 %v2230_v18  ;;  %v1449_v5 = vld [vmem:[%s2734_s4 + $0x4] sm:$0x3] }
 0xbfb   :  { %v1454_v20 = vrot.slane %v1449_v5, %v2487_v34 }
 0xbfc   :  { %1395 = vadd.xlane.f32.xlu0 %v1390_v21 }
 0xbfd   :  { %1978 = vmatpush3.bf16.msra.mxu0 %v2231_v4 }
 0xbfe   :  { %1979 = vmatprep.subr.bf16.mxu0 %v2232_v13 }
 0xc01   :  { %1980 = vmatpush3.bf16.msra.mxu0 %v2233_v19 }
 0xc87   :  { %v1394_v27 = vpop.xlane.xlu1 %1393 }
 0xc88   :  { %v1398_v41 = vmul.f32 0.0078125, %v1394_v27 }
 0xc89   :  { %v1396_v54 = vpop.xlane.xlu0 %1395 }
 0xc8a   :  { %v1400_v60 = vsub.f32 %v1389_v55, %v1398_v41  ;;  %v1399_v61 = vmul.f32 0.0078125, %v1396_v54  ;;  %v1458_v55 = vrot.slane %v1449_v5, %v106_v31 }
 0xc8c   :  { %v2689_v45 = vsub.f32 %v1390_v21, %v1399_v61  ;;  %v1402_v23 = vmul.f32 %v1400_v60, %v1400_v60 }
 0xc8e   :  { %1404 = vadd.xlane.f32.xlu0 %v1402_v23  ;;  %v1403_v24 = vmul.f32 %v2689_v45, %v2689_v45 }
 0xc92   :  { %1406 = vadd.xlane.f32.xlu0 %v1403_v24 }
 0xd1b   :  { %v1405_v58 = vpop.xlane.xlu0 %1404 }
 0xd1c   :  { %v1408_v59 = vmul.f32 0.0078125, %v1405_v58 }
 0xd1e   :  { %v1410_v62 = vadd.f32 1e-06, %v1408_v59  ;;  %v1913_v59 = vld [vmem:[%s2734_s4 + $0x9] ss:$0 sm:$0xff] }
 0xd1f   :  { %v1407_v63 = vpop.xlane.xlu0 %1406 }
 0xd20   :  { %2266 = vrsqrt.f32 %v1410_v62  ;;  %v1409_v2 = vmul.f32 0.0078125, %v1407_v63 }
 0xd22   :  { %v1411_v3 = vadd.f32 1e-06, %v1409_v2  ;;  %v1914_v2 = vld [vmem:[%s2734_s4 + $0xa] ss:$0 sm:$0xff] }
 0xd24   :  { %2268 = vrsqrt.f32 %v1411_v3 }
 0xd2a   :  { %v2267_v6 = vpop.eup %2266 }
 0xd2b   :  { %v1414_v1 = vmul.f32 %v2267_v6, %v1400_v60 }
 0xd2d   :  { %v1422_v10 = vmul.f32 %v1878_v7, %v1414_v1 }
 0xd2e   :  { %v2269_v8 = vpop.eup %2268 }
 0xd2f   :  { %v1415_v9 = vmul.f32 %v2269_v8, %v2689_v45  ;;  %v1430_v14 = vadd.f32 %v1879_v11, %v1422_v10 }
 0xd31   :  { %v1423_v12 = vmul.f32 %v1878_v7, %v1415_v9 }
 0xd33   :  { %v1431_v15 = vadd.f32 %v1879_v11, %v1423_v12 }
 0xd35   :  { %v1448_v16 = vpack.c.bf16 %v1431_v15, %v1430_v14 }
 0xd37   :  { %1574 = vmatmul.mubr.bf16.vlgmr.msra.gmra.mrb[44].mxu1 %v1448_v16 }
 0xe0a   :  { %v1575_v21 = vpop.f32.mrb[44].mxu1 }
 0xe0b   :  { %v1576_v22 = vadd.f32 %v1575_v21, %v1454_v20  ;;  %v1577_v25 = vpop.f32.mrb[45].mxu1 }
 0xe0c   :  { %v1578_v26 = vadd.f32 %v1577_v25, %v1458_v55  ;;  %v1579_v39 = vpop.f32.mrb[46].mxu1 }
 0xe0d   :  { %v1580_v27 = vadd.f32 %v1579_v39, %v1454_v20  ;;  %v1581_v41 = vpop.f32.mrb[47].mxu1  ;;  %v1584_v60 = vmax.f32 %v1576_v22, 0.0 }
 0xe0e   :  { %v1582_v54 = vadd.f32 %v1581_v41, %v1458_v55  ;;  %v1585_v45 = vmax.f32 %v1578_v26, 0.0 }
 0xe0f   :  { %v1586_v61 = vmax.f32 %v1580_v27, 0.0 }
 0xe10   :  { %v1587_v23 = vmax.f32 %v1582_v54, 0.0 }
 0xe11   :  { %v1588_v24 = vpack.c.bf16 %v1586_v61, %v1584_v60 }
 0xe12   :  { %v1589_v28 = vpack.c.bf16 %v1587_v23, %v1585_v45 }
 0xe14   :  { %1757 = vmatprep.mubr.bf16.mxu0 %v1589_v28 }
 0xe15   :  { %1758 = vmatmul.mubr.bf16.vlgmr.msra.gmra.mrb[32].mxu0 %v1588_v24 }
 0xee8   :  { %v1981_v34 = vpop.f32.mrb[32].mxu0 }
 0xee9   :  { %v1982_v31 = vpop.f32.mrb[33].mxu0 }
 0xeea   :  { %v1983_v49 = vadd.f32 %v1982_v31, %v1981_v34  ;;  %v1984_v29 = vpop.f32.mrb[34].mxu0 }
 0xeeb   :  { %v1985_v32 = vpop.f32.mrb[35].mxu0 }
 0xeec   :  { %v1760_v33 = vadd.f32 %v1983_v49, %v1896_v30  ;;  %v1986_v35 = vadd.f32 %v1985_v32, %v1984_v29 }
 0xeee   :  { %v1763_v56 = vadd.f32 %v1986_v35, %v1896_v30  ;;  %v1766_v36 = vadd.f32 %v1760_v33, %v1430_v14 }
 0xef0   :  { %1770 = vadd.xlane.f32.xlu1 %v1766_v36  ;;  %v1767_v37 = vadd.f32 %v1763_v56, %v1431_v15 }
 0xef2   :  { %1772 = vadd.xlane.f32.xlu0 %v1767_v37 }
 0xf7d   :  { %v1771_v38 = vpop.xlane.xlu1 %1770 }
 0xf7e   :  { %v1774_v40 = vmul.f32 0.0078125, %v1771_v38 }
 0xf7f   :  { %v1773_v42 = vpop.xlane.xlu0 %1772 }
 0xf80   :  { %v1776_v43 = vsub.f32 %v1766_v36, %v1774_v40  ;;  %v1775_v0 = vmul.f32 0.0078125, %v1773_v42 }
 0xf82   :  { %v1777_v44 = vsub.f32 %v1767_v37, %v1775_v0  ;;  %v1778_v46 = vmul.f32 %v1776_v43, %v1776_v43 }
 0xf84   :  { %1780 = vadd.xlane.f32.xlu1 %v1778_v46  ;;  %v1779_v47 = vmul.f32 %v1777_v44, %v1777_v44 }
 0xf86   :  { %1782 = vadd.xlane.f32.xlu0 %v1779_v47 }
0x1011   :  { %v1781_v48 = vpop.xlane.xlu1 %1780 }
0x1012   :  { %v1784_v50 = vmul.f32 0.0078125, %v1781_v48 }
0x1013   :  { %v1783_v51 = vpop.xlane.xlu0 %1782 }
0x1014   :  { %v1786_v52 = vadd.f32 1e-06, %v1784_v50  ;;  %v1785_v53 = vmul.f32 0.0078125, %v1783_v51 }
0x1016   :  { %2270 = vrsqrt.f32 %v1786_v52  ;;  %v1787_v57 = vadd.f32 1e-06, %v1785_v53 }
0x1018   :  { %2272 = vrsqrt.f32 %v1787_v57 }
0x1020   :  { %v2271_v58 = vpop.eup %2270 }
0x1021   :  { %v1790_v62 = vmul.f32 %v2271_v58, %v1776_v43 }
0x1022   :  { %v2273_v63 = vpop.eup %2272 }
0x1023   :  { %v1791_v3 = vmul.f32 %v2273_v63, %v1777_v44  ;;  %v1798_v6 = vmul.f32 %v1913_v59, %v1790_v62 }
0x1025   :  { %v1799_v1 = vmul.f32 %v1913_v59, %v1791_v3  ;;  %v1806_v7 = vadd.f32 %v1914_v2, %v1798_v6 }
0x1027   :  { %v1807_v8 = vadd.f32 %v1914_v2, %v1799_v1  ;;  %1808 = vst [vmem:[#allocation8] sm:$0xff] %v1806_v7 }
0x1029   :  { %1809 = vst [vmem:[#allocation8 + $0x8] sm:$0xff] %v1807_v8 }
0x102a   :  { %2351 = shalt.err (!%p2348_p0)
}
0x102b   :  { %s2352_s4 = scalar_lea.hbm %s2735_s5, 256 }
0x102c   :  { %p2353_p1 = scmp.ne.s32.totalorder %s2735_s5, %s2352_s4  ;;  %p2356_p2 = scmp.lt.u32.totalorder %s2352_s4, %s2735_s5 }
0x102e   :  { %p2358_p3 = pnand %p2356_p2, %p2353_p1 }
0x1030   :  { %2361 = shalt.err (!%p2358_p3)
}
0x1031   :  { %1821 = dma.vmem_to_hbm [thread:$0]  %s1816_s28, 256, %s2735_s5, [#allocation4], %s2372_s2, %s2372_s2, %s2373_s17  }
0x1032   :  { %2366 = dma.done.wait [#allocation4], 256  }
0x1033   :  { %2367 = vsyncadd [#allocation4], 4294967040 }
0x1034   :  { %1825 = vsyncpa [#allocation3], 1 }
0x1035   :  { %1826 = vsyncpa [#allocation6], 1 }
0x1036   :  { %1827 = vsyncpa [#allocation4], 1 }

</bundles_post_ra>
